<compile_context>
chip_gen: v5e
topology: v5e:2x2
jax: 0.10.0
libtpu: 0.0.40
codegen_flags: <defaults>
</compile_context>

<pallas_src>
import jax
import jax.numpy as jnp
from jax.experimental import pallas as pl
from jax.experimental.pallas import tpu as pltpu

LANE = 128                       # outputs padded to this lane width (dense vst)
_VMEM_LIMIT = 48 * 1024 * 1024   # fits v7x's 64 MiB physical VMEM with headroom
                                 # (v5e/v6e have 128 MiB; raising this + col_tile
                                 #  there buys more pipelining headroom)


def _round_up(v, m):
    return ((v + m - 1) // m) * m


def _choose_tiles(n, row_tile, col_tile):
    """Row tile (MXU fill), column/reduction tile, padded node count.

    n_pad is a multiple of 256 so int8 (32,128) tiling is always legal and
    every tile divides n_pad exactly (no overhanging blocks)."""
    n_pad = _round_up(n, 256)
    tm = 32
    for t in (256, 128, 64, 32):          # 256 fills the v6e/v7x MXU rows
        if row_tile >= t:
            tm = t
            break
    q = n_pad // 256
    g = 1
    for d in range(1, q + 1):             # largest 256*d <= col_tile dividing n_pad
        if q % d == 0 and d * 256 <= col_tile:
            g = d
    tk = 256 * g
    return tm, tk, n_pad


# ---------------------------------------------------------------------------
# Kernels.  All MXU matmuls are bf16 x bf16 with f32 accumulation; the int8
# A_hat tile is upcast to bf16 in VMEM (VPU filler under a mem-bound stream),
# and all D^{-1/2} / bias / ReLU math happens in f32.
# ---------------------------------------------------------------------------
def _agg_relu_transform_kernel(a_ref, f_ref, dinv_ref, b1_ref, w2_ref, o_ref, acc_ref):
    """Accumulate A_hat[i, k-tile] @ xw1s[k-tile] into f32 scratch; at the last
    k-tile apply the layer-1 epilogue and the fused layer-2 feature transform:
        o[i] = dinv[i] * ( relu(dinv[i] * acc + b1) @ W2 )          (bf16 store)
    """
    k = pl.program_id(1)

    @pl.when(k == 0)
    def _init():
        acc_ref[...] = jnp.zeros_like(acc_ref)

    a = a_ref[...].astype(jnp.float32).astype(jnp.bfloat16)     # int8 -> bf16
    acc_ref[...] += jnp.dot(a, f_ref[...], preferred_element_type=jnp.float32)

    @pl.when(k == pl.num_programs(1) - 1)
    def _finish():
        dinv = dinv_ref[...]                                     # (tm, 1) f32
        h = jnp.maximum(acc_ref[...] * dinv + b1_ref[...], 0.0)  # f32 epilogue
        hw2 = jnp.dot(h.astype(jnp.bfloat16), w2_ref[...],
                      preferred_element_type=jnp.float32)
        # dinv here is the *column*-side D^{-1/2} of the layer-2 aggregation.
        o_ref[...] = (hw2 * dinv).astype(o_ref.dtype)


def _agg_bias_kernel(a_ref, f_ref, dinv_ref, b2_ref, o_ref, acc_ref):
    """Accumulate A_hat[i, k-tile] @ hw2s[k-tile]; at the last k-tile:
        o[i] = dinv[i] * acc + b2                                  (f32 store)
    """
    k = pl.program_id(1)

    @pl.when(k == 0)
    def _init():
        acc_ref[...] = jnp.zeros_like(acc_ref)

    a = a_ref[...].astype(jnp.float32).astype(jnp.bfloat16)
    acc_ref[...] += jnp.dot(a, f_ref[...], preferred_element_type=jnp.float32)

    @pl.when(k == pl.num_programs(1) - 1)
    def _finish():
        o_ref[...] = (acc_ref[...] * dinv_ref[...] + b2_ref[...]).astype(o_ref.dtype)


# ---------------------------------------------------------------------------
# Plain-JAX glue: int8 A_hat (built directly at padded size) and f32 D^{-1/2}.
# ---------------------------------------------------------------------------
def build_adjacency(edge_index, num_nodes, n_pad):
    """A_hat as int8 (n_pad, n_pad) and D^{-1/2} as f32 (n_pad, 1).

    Matches PyG gcn_norm's add_remaining_self_loops: every node gets exactly
    one self loop (existing self-loop edges are not double counted); duplicate
    non-self edges keep their multiplicity."""
    src, dst = edge_index[0], edge_index[1]
    not_loop = src != dst
    w_f32 = jnp.where(not_loop, 1.0, 0.0)

    # In-degree (non-self edges) + the single self loop -> always >= 1.
    deg = jnp.zeros((num_nodes,), jnp.float32).at[dst].add(w_f32) + 1.0
    dinv = jax.lax.rsqrt(deg)

    a = jnp.zeros((n_pad, n_pad), jnp.int8)
    a = a.at[dst, src].add(jnp.where(not_loop, 1, 0).astype(jnp.int8))
    idx = jnp.arange(num_nodes)
    a = a.at[idx, idx].set(jnp.ones((num_nodes,), jnp.int8))

    dinv_pad = jnp.zeros((n_pad, 1), jnp.float32).at[:num_nodes, 0].set(dinv)
    return a, dinv_pad


# ---------------------------------------------------------------------------
# Wrapper: tiling, padding, and the two streamed passes over A_hat.
# ---------------------------------------------------------------------------
def gcn_encoder(x, edge_index, w1, b1, w2, b2, *, row_tile=256, col_tile=2048):
    n, _ = x.shape
    hid = w1.shape[1]
    out_ch = w2.shape[1]
    out_p = _round_up(out_ch, LANE)      # lane-dense output stores

    tm, tk, n_pad = _choose_tiles(n, row_tile, col_tile)
    grid = (n_pad // tm, n_pad // tk)    # (row tiles: parallel, col tiles: reduction)

    a_hat, dinv = build_adjacency(edge_index, n, n_pad)

    # Layer-1 feature transform with the column-side D^{-1/2} folded in.  The
    # contraction dim (in_channels) is tiny, so a dedicated pallas_call would
    # only add launch overhead + an extra HBM round trip; XLA fuses this fine.
    xw1s = (dinv[:n] * (x @ w1)).astype(jnp.bfloat16)
    xw1s = jnp.pad(xw1s, ((0, n_pad - n), (0, 0)))     # (n_pad, hid) — no lane pad

    w2_p = jnp.pad(w2, ((0, 0), (0, out_p - out_ch))).astype(jnp.bfloat16)
    b1_p = b1.reshape(1, hid).astype(jnp.float32)
    b2_p = jnp.pad(b2.reshape(1, -1), ((0, 0), (0, out_p - out_ch))).astype(jnp.float32)

    cparams = pltpu.CompilerParams(
        dimension_semantics=("parallel", "arbitrary"),  # rows across TCs, cols reduce
        vmem_limit_bytes=_VMEM_LIMIT,
    )
    a_spec = pl.BlockSpec((tm, tk), lambda i, k: (i, k))
    dinv_spec = pl.BlockSpec((tm, 1), lambda i, k: (i, 0))
    out_row_spec = pl.BlockSpec((tm, out_p), lambda i, k: (i, 0))

    # Pass 1 over A:  hw2s = dinv * ( relu(dinv * (A_hat @ xw1s) + b1) @ W2 )
    hw2s = pl.pallas_call(
        _agg_relu_transform_kernel,
        out_shape=jax.ShapeDtypeStruct((n_pad, out_p), jnp.bfloat16),
        grid=grid,
        in_specs=[
            a_spec,                                            # int8 A_hat tile
            pl.BlockSpec((tk, hid), lambda i, k: (k, 0)),      # xw1s k-tile
            dinv_spec,                                         # row-side D^{-1/2}
            pl.BlockSpec((1, hid), lambda i, k: (0, 0)),       # b1
            pl.BlockSpec((hid, out_p), lambda i, k: (0, 0)),   # W2
        ],
        out_specs=out_row_spec,
        scratch_shapes=[pltpu.VMEM((tm, hid), jnp.float32)],   # f32 accumulator
        compiler_params=cparams,
    )(a_hat, xw1s, dinv, b1_p, w2_p)

    # Pass 2 over A:  out = dinv * (A_hat @ hw2s) + b2
    out_pad = pl.pallas_call(
        _agg_bias_kernel,
        out_shape=jax.ShapeDtypeStruct((n_pad, out_p), jnp.float32),
        grid=grid,
        in_specs=[
            a_spec,
            pl.BlockSpec((tk, out_p), lambda i, k: (k, 0)),    # hw2s k-tile
            dinv_spec,
            pl.BlockSpec((1, out_p), lambda i, k: (0, 0)),     # b2
        ],
        out_specs=out_row_spec,
        scratch_shapes=[pltpu.VMEM((tm, out_p), jnp.float32)],
        compiler_params=cparams,
    )(a_hat, hw2s, dinv, b2_p)

    return out_pad[:n, :out_ch]


# ---------------------------------------------------------------------------
# Reference + test harness.
# ---------------------------------------------------------------------------
def _reference(x, edge_index, w1, b1, w2, b2):
    """Pure dense-f32 reference of the module forward."""
    n = x.shape[0]
    src, dst = edge_index[0], edge_index[1]
    w = jnp.where(src != dst, 1.0, 0.0)
    a = jnp.zeros((n, n), jnp.float32).at[dst, src].add(w)
    idx = jnp.arange(n)
    a = a.at[idx, idx].set(1.0)
    deg = a.sum(axis=1)
    dinv = jax.lax.rsqrt(deg)
    a_norm = dinv[:, None] * a * dinv[None, :]
    h = jnp.maximum(a_norm @ (x @ w1) + b1[None, :], 0.0)
    return a_norm @ (h @ w2) + b2[None, :]


def glorot(key, shape):
    fan_in, fan_out = shape
    limit = jnp.sqrt(6.0 / (fan_in + fan_out))
    return jax.random.uniform(key, shape, jnp.float32, -limit, limit)


if __name__ == "__main__":
    N = 256           # graph nodes
    IN_CH = 16        # in_channels
    OUT_CH = 8        # out_channels
    HID = 2 * OUT_CH  # conv1 output width

    key = jax.random.PRNGKey(0)
    kx, k1, k2 = jax.random.split(key, 3)

    x = jax.random.normal(kx, (N, IN_CH), jnp.float32)

    # Deterministic bidirectional ring graph; edge_index is [2, E].
    src = jnp.arange(N, dtype=jnp.int32)
    dst = (src + 1) % N
    edge_index = jnp.stack(
        [jnp.concatenate([src, dst]), jnp.concatenate([dst, src])], axis=0)

    # PyG GCNConv defaults: glorot weights, zero bias.
    w1 = glorot(k1, (IN_CH, HID))
    b1 = jnp.zeros((HID,), jnp.float32)
    w2 = glorot(k2, (HID, OUT_CH))
    b2 = jnp.zeros((OUT_CH,), jnp.float32)

    out = jax.jit(gcn_encoder)(x, edge_index, w1, b1, w2, b2)
    out = jax.block_until_ready(out)

    ref = _reference(x, edge_index, w1, b1, w2, b2)
    assert out.shape == (N, OUT_CH)
    # Kernel stores xw1s / hw2s in bf16 (A_hat and all normalization are exact
    # in int8/f32), so the tolerance only covers two bf16 feature roundings.
    assert jnp.allclose(out, ref, atol=5e-2, rtol=5e-2), "mismatch vs JAX reference"

    print("KERNEL_OK")
</pallas_src>

<mosaic_0001>
module attributes {stable_mosaic.version = 11 : i64} {
  func.func @_agg_relu_transform_kernel(%arg0: i32, %arg1: i32, %arg2: memref<256x256xi8, #tpu.memory_space<vmem>>, %arg3: memref<256x16xbf16, #tpu.memory_space<vmem>>, %arg4: memref<256x1xf32, #tpu.memory_space<vmem>>, %arg5: memref<1x16xf32, #tpu.memory_space<vmem>>, %arg6: memref<16x128xbf16, #tpu.memory_space<vmem>>, %arg7: memref<256x128xbf16, #tpu.memory_space<vmem>>, %arg8: memref<256x16xf32, #tpu.memory_space<vmem>>) attributes {dimension_semantics = [#tpu.dimension_semantics<parallel>, #tpu.dimension_semantics<arbitrary>], iteration_bounds = array<i64: 1, 1>, scalar_prefetch = 0 : i64, scratch_operands = 1 : i64, tpu.core_type = #tpu.core_type<tc>, window_params = [{transform_indices = @transform_0, window_bounds = array<i64: 256, 256>}, {transform_indices = @transform_1, window_bounds = array<i64: 256, 16>}, {transform_indices = @transform_2, window_bounds = array<i64: 256, 1>}, {pipeline_mode = #tpu.pipeline_mode<synchronous>, transform_indices = @transform_3, window_bounds = array<i64: 1, 16>}, {pipeline_mode = #tpu.pipeline_mode<synchronous>, transform_indices = @transform_4, window_bounds = array<i64: 16, 128>}, {transform_indices = @transform_5, window_bounds = array<i64: 256, 128>}]} {
    %c0_i32 = arith.constant 0 : i32
    %0 = arith.cmpi eq, %arg1, %c0_i32 : i32
    %1 = arith.extui %0 : i1 to i32
    %c0_i32_0 = arith.constant 0 : i32
    %2 = arith.cmpi ne, %1, %c0_i32_0 : i32
    scf.if %2 {
      %cst_10 = arith.constant 0.000000e+00 : f32
      %14 = vector.broadcast %cst_10 : f32 to vector<256x16xf32>
      %c0_11 = arith.constant 0 : index
      %c0_12 = arith.constant 0 : index
      %15 = vector.load %arg8[%c0_11, %c0_12] : memref<256x16xf32, #tpu.memory_space<vmem>>, vector<256x16xf32>
      tpu.vector_store %arg8[%c0_11, %c0_12], %14 {strides = array<i32>} : memref<256x16xf32, #tpu.memory_space<vmem>>, vector<256x16xf32>,
    } else {
    }
    %c0 = arith.constant 0 : index
    %c0_1 = arith.constant 0 : index
    %3 = vector.load %arg2[%c0, %c0_1] : memref<256x256xi8, #tpu.memory_space<vmem>>, vector<256x256xi8>
    %4 = arith.sitofp %3 : vector<256x256xi8> to vector<256x256xf32>
    %5 = arith.truncf %4 : vector<256x256xf32> to vector<256x256xbf16>
    %c0_2 = arith.constant 0 : index
    %c0_3 = arith.constant 0 : index
    %6 = vector.load %arg8[%c0_2, %c0_3] : memref<256x16xf32, #tpu.memory_space<vmem>>, vector<256x16xf32>
    %c0_4 = arith.constant 0 : index
    %c0_5 = arith.constant 0 : index
    %7 = vector.load %arg3[%c0_4, %c0_5] : memref<256x16xbf16, #tpu.memory_space<vmem>>, vector<256x16xbf16>
    %cst = arith.constant dense<0.000000e+00> : vector<256x16xf32>
    %8 = tpu.matmul %5, %7, %cst {dimension_numbers = #tpu.dot_dimension_numbers<[1], [0], [0], [1], [0, 0, 1, 1], [], []>} : vector<256x256xbf16>, vector<256x16xbf16>, vector<256x16xf32> -> vector<256x16xf32>
    %9 = arith.addf %6, %8 : vector<256x16xf32>
    %c0_6 = arith.constant 0 : index
    %c0_7 = arith.constant 0 : index
    %10 = vector.load %arg8[%c0_6, %c0_7] : memref<256x16xf32, #tpu.memory_space<vmem>>, vector<256x16xf32>
    tpu.vector_store %arg8[%c0_6, %c0_7], %9 {strides = array<i32>} : memref<256x16xf32, #tpu.memory_space<vmem>>, vector<256x16xf32>,
    %c0_i32_8 = arith.constant 0 : i32
    %11 = arith.cmpi eq, %arg1, %c0_i32_8 : i32
    %12 = arith.extui %11 : i1 to i32
    %c0_i32_9 = arith.constant 0 : i32
    %13 = arith.cmpi ne, %12, %c0_i32_9 : i32
    scf.if %13 {
      %c0_10 = arith.constant 0 : index
      %c0_11 = arith.constant 0 : index
      %14 = vector.load %arg4[%c0_10, %c0_11] : memref<256x1xf32, #tpu.memory_space<vmem>>, vector<256x1xf32>
      %c0_12 = arith.constant 0 : index
      %c0_13 = arith.constant 0 : index
      %15 = vector.load %arg8[%c0_12, %c0_13] : memref<256x16xf32, #tpu.memory_space<vmem>>, vector<256x16xf32>
      %16 = vector.broadcast %14 : vector<256x1xf32> to vector<256x16xf32>
      %17 = arith.mulf %15, %16 : vector<256x16xf32>
      %c0_14 = arith.constant 0 : index
      %c0_15 = arith.constant 0 : index
      %18 = vector.load %arg5[%c0_14, %c0_15] : memref<1x16xf32, #tpu.memory_space<vmem>>, vector<1x16xf32>
      %19 = vector.broadcast %18 : vector<1x16xf32> to vector<256x16xf32>
      %20 = arith.addf %17, %19 : vector<256x16xf32>
      %cst_16 = arith.constant 0.000000e+00 : f32
      %21 = vector.broadcast %cst_16 : f32 to vector<256x16xf32>
      %22 = arith.maximumf %20, %21 : vector<256x16xf32>
      %23 = arith.truncf %22 : vector<256x16xf32> to vector<256x16xbf16>
      %c0_17 = arith.constant 0 : index
      %c0_18 = arith.constant 0 : index
      %24 = vector.load %arg6[%c0_17, %c0_18] : memref<16x128xbf16, #tpu.memory_space<vmem>>, vector<16x128xbf16>
      %cst_19 = arith.constant dense<0.000000e+00> : vector<256x128xf32>
      %25 = tpu.matmul %23, %24, %cst_19 {dimension_numbers = #tpu.dot_dimension_numbers<[1], [0], [0], [1], [0, 0, 1, 1], [], []>} : vector<256x16xbf16>, vector<16x128xbf16>, vector<256x128xf32> -> vector<256x128xf32>
      %26 = vector.broadcast %14 : vector<256x1xf32> to vector<256x128xf32>
      %27 = arith.mulf %25, %26 : vector<256x128xf32>
      %28 = arith.truncf %27 : vector<256x128xf32> to vector<256x128xbf16>
      %c0_20 = arith.constant 0 : index
      %c0_21 = arith.constant 0 : index
      %29 = vector.load %arg7[%c0_20, %c0_21] : memref<256x128xbf16, #tpu.memory_space<vmem>>, vector<256x128xbf16>
      tpu.vector_store %arg7[%c0_20, %c0_21], %28 {strides = array<i32>} : memref<256x128xbf16, #tpu.memory_space<vmem>>, vector<256x128xbf16>,
    } else {
    }
    return
  }
  func.func @transform_0(%arg0: i32, %arg1: i32) -> (i32, i32) {
    %c0_i32 = arith.constant 0 : i32
    return %arg0, %arg1 : i32, i32
  }
  func.func @transform_1(%arg0: i32, %arg1: i32) -> (i32, i32) {
    %c0_i32 = arith.constant 0 : i32
    %c0_i32_0 = arith.constant 0 : i32
    return %arg1, %c0_i32 : i32, i32
  }
  func.func @transform_2(%arg0: i32, %arg1: i32) -> (i32, i32) {
    %c0_i32 = arith.constant 0 : i32
    %c0_i32_0 = arith.constant 0 : i32
    return %arg0, %c0_i32 : i32, i32
  }
  func.func @transform_3(%arg0: i32, %arg1: i32) -> (i32, i32) {
    %c0_i32 = arith.constant 0 : i32
    %c0_i32_0 = arith.constant 0 : i32
    %c0_i32_1 = arith.constant 0 : i32
    return %c0_i32, %c0_i32_0 : i32, i32
  }
  func.func @transform_4(%arg0: i32, %arg1: i32) -> (i32, i32) {
    %c0_i32 = arith.constant 0 : i32
    %c0_i32_0 = arith.constant 0 : i32
    %c0_i32_1 = arith.constant 0 : i32
    return %c0_i32, %c0_i32_0 : i32, i32
  }
  func.func @transform_5(%arg0: i32, %arg1: i32) -> (i32, i32) {
    %c0_i32 = arith.constant 0 : i32
    %c0_i32_0 = arith.constant 0 : i32
    return %arg0, %c0_i32 : i32, i32
  }
}

module attributes {stable_mosaic.version = 11 : i64} {
  func.func @_agg_bias_kernel(%arg0: i32, %arg1: i32, %arg2: memref<256x256xi8, #tpu.memory_space<vmem>>, %arg3: memref<256x128xbf16, #tpu.memory_space<vmem>>, %arg4: memref<256x1xf32, #tpu.memory_space<vmem>>, %arg5: memref<1x128xf32, #tpu.memory_space<vmem>>, %arg6: memref<256x128xf32, #tpu.memory_space<vmem>>, %arg7: memref<256x128xf32, #tpu.memory_space<vmem>>) attributes {dimension_semantics = [#tpu.dimension_semantics<parallel>, #tpu.dimension_semantics<arbitrary>], iteration_bounds = array<i64: 1, 1>, scalar_prefetch = 0 : i64, scratch_operands = 1 : i64, tpu.core_type = #tpu.core_type<tc>, window_params = [{transform_indices = @transform_0, window_bounds = array<i64: 256, 256>}, {transform_indices = @transform_1, window_bounds = array<i64: 256, 128>}, {transform_indices = @transform_2, window_bounds = array<i64: 256, 1>}, {pipeline_mode = #tpu.pipeline_mode<synchronous>, transform_indices = @transform_3, window_bounds = array<i64: 1, 128>}, {transform_indices = @transform_4, window_bounds = array<i64: 256, 128>}]} {
    %c0_i32 = arith.constant 0 : i32
    %0 = arith.cmpi eq, %arg1, %c0_i32 : i32
    %1 = arith.extui %0 : i1 to i32
    %c0_i32_0 = arith.constant 0 : i32
    %2 = arith.cmpi ne, %1, %c0_i32_0 : i32
    scf.if %2 {
      %cst_10 = arith.constant 0.000000e+00 : f32
      %14 = vector.broadcast %cst_10 : f32 to vector<256x128xf32>
      %c0_11 = arith.constant 0 : index
      %c0_12 = arith.constant 0 : index
      %15 = vector.load %arg7[%c0_11, %c0_12] : memref<256x128xf32, #tpu.memory_space<vmem>>, vector<256x128xf32>
      tpu.vector_store %arg7[%c0_11, %c0_12], %14 {strides = array<i32>} : memref<256x128xf32, #tpu.memory_space<vmem>>, vector<256x128xf32>,
    } else {
    }
    %c0 = arith.constant 0 : index
    %c0_1 = arith.constant 0 : index
    %3 = vector.load %arg2[%c0, %c0_1] : memref<256x256xi8, #tpu.memory_space<vmem>>, vector<256x256xi8>
    %4 = arith.sitofp %3 : vector<256x256xi8> to vector<256x256xf32>
    %5 = arith.truncf %4 : vector<256x256xf32> to vector<256x256xbf16>
    %c0_2 = arith.constant 0 : index
    %c0_3 = arith.constant 0 : index
    %6 = vector.load %arg7[%c0_2, %c0_3] : memref<256x128xf32, #tpu.memory_space<vmem>>, vector<256x128xf32>
    %c0_4 = arith.constant 0 : index
    %c0_5 = arith.constant 0 : index
    %7 = vector.load %arg3[%c0_4, %c0_5] : memref<256x128xbf16, #tpu.memory_space<vmem>>, vector<256x128xbf16>
    %cst = arith.constant dense<0.000000e+00> : vector<256x128xf32>
    %8 = tpu.matmul %5, %7, %cst {dimension_numbers = #tpu.dot_dimension_numbers<[1], [0], [0], [1], [0, 0, 1, 1], [], []>} : vector<256x256xbf16>, vector<256x128xbf16>, vector<256x128xf32> -> vector<256x128xf32>
    %9 = arith.addf %6, %8 : vector<256x128xf32>
    %c0_6 = arith.constant 0 : index
    %c0_7 = arith.constant 0 : index
    %10 = vector.load %arg7[%c0_6, %c0_7] : memref<256x128xf32, #tpu.memory_space<vmem>>, vector<256x128xf32>
    tpu.vector_store %arg7[%c0_6, %c0_7], %9 {strides = array<i32>} : memref<256x128xf32, #tpu.memory_space<vmem>>, vector<256x128xf32>,
    %c0_i32_8 = arith.constant 0 : i32
    %11 = arith.cmpi eq, %arg1, %c0_i32_8 : i32
    %12 = arith.extui %11 : i1 to i32
    %c0_i32_9 = arith.constant 0 : i32
    %13 = arith.cmpi ne, %12, %c0_i32_9 : i32
    scf.if %13 {
      %c0_10 = arith.constant 0 : index
      %c0_11 = arith.constant 0 : index
      %14 = vector.load %arg7[%c0_10, %c0_11] : memref<256x128xf32, #tpu.memory_space<vmem>>, vector<256x128xf32>
      %c0_12 = arith.constant 0 : index
      %c0_13 = arith.constant 0 : index
      %15 = vector.load %arg4[%c0_12, %c0_13] : memref<256x1xf32, #tpu.memory_space<vmem>>, vector<256x1xf32>
      %16 = vector.broadcast %15 : vector<256x1xf32> to vector<256x128xf32>
      %17 = arith.mulf %14, %16 : vector<256x128xf32>
      %c0_14 = arith.constant 0 : index
      %c0_15 = arith.constant 0 : index
      %18 = vector.load %arg5[%c0_14, %c0_15] : memref<1x128xf32, #tpu.memory_space<vmem>>, vector<1x128xf32>
      %19 = vector.broadcast %18 : vector<1x128xf32> to vector<256x128xf32>
      %20 = arith.addf %17, %19 : vector<256x128xf32>
      %c0_16 = arith.constant 0 : index
      %c0_17 = arith.constant 0 : index
      %21 = vector.load %arg6[%c0_16, %c0_17] : memref<256x128xf32, #tpu.memory_space<vmem>>, vector<256x128xf32>
      tpu.vector_store %arg6[%c0_16, %c0_17], %20 {strides = array<i32>} : memref<256x128xf32, #tpu.memory_space<vmem>>, vector<256x128xf32>,
    } else {
    }
    return
  }
  func.func @transform_0(%arg0: i32, %arg1: i32) -> (i32, i32) {
    %c0_i32 = arith.constant 0 : i32
    return %arg0, %arg1 : i32, i32
  }
  func.func @transform_1(%arg0: i32, %arg1: i32) -> (i32, i32) {
    %c0_i32 = arith.constant 0 : i32
    %c0_i32_0 = arith.constant 0 : i32
    return %arg1, %c0_i32 : i32, i32
  }
  func.func @transform_2(%arg0: i32, %arg1: i32) -> (i32, i32) {
    %c0_i32 = arith.constant 0 : i32
    %c0_i32_0 = arith.constant 0 : i32
    return %arg0, %c0_i32 : i32, i32
  }
  func.func @transform_3(%arg0: i32, %arg1: i32) -> (i32, i32) {
    %c0_i32 = arith.constant 0 : i32
    %c0_i32_0 = arith.constant 0 : i32
    %c0_i32_1 = arith.constant 0 : i32
    return %c0_i32, %c0_i32_0 : i32, i32
  }
  func.func @transform_4(%arg0: i32, %arg1: i32) -> (i32, i32) {
    %c0_i32 = arith.constant 0 : i32
    %c0_i32_0 = arith.constant 0 : i32
    return %arg0, %c0_i32 : i32, i32
  }
}

</mosaic_0001>

<bundles_post_ra>
// kernel: gcn_encoder.2
= control target key start
LH: loop header
LB: loop body
LE: loop exit
PB: predicated region body
PF: predicated region fallthrough
CT: control target
= control target key end

     0   :  { %v1571_v0 = vmov 0   ;;  %vm25_vm0 = vcmask 130048   ;;  %s2203_s2 = inlined_call_operand.vmem [shape: f32[256,1], index: 2, kind: input, shape index: {}]   ;;  %s2204_s1 = inlined_call_operand.vmem [shape: bf16[256,16], index: 1, kind: input, shape index: {}]   ;;  %s2205_s0 = inlined_call_operand.vmem [shape: s8[256,256], index: 0, kind: input, shape index: {}]   ;;  %s2206_s3 = inlined_call_operand.vmem [shape: f32[1,16], index: 3, kind: input, shape index: {}]   ;;  %s2207_s4 = inlined_call_operand.vmem [shape: bf16[16,128], index: 4, kind: input, shape index: {}]   ;;  %s2208_s5 = inlined_call_operand.vmem [shape: bf16[256,128], index: 5, kind: output, shape index: {}]  }
   0x1   :  { %1568 = vset.pattern.permute.xlu1 %v1571_v0  ;;  %1567 = vset.pattern.permute.xlu0 %v1571_v0  ;;  %v658_v1 = vld [vmem:[%s2203_s2 + $0x10] sm:$0xff]  ;;  %v656_v2 = vld [vmem:[%s2203_s2] sm:$0xff]  ;;  %v1332_v3 = vld [vmem:[%s2204_s1 + $0x38] sm:$0xff] }
   0x2   :  { %732 = vperm.xlu1 %1568, %v658_v1   ;;  %722 = vperm.xlu0 %1567, %v656_v2   ;;  %v1615_v4 = vld [vmem:[%s2204_s1 + $0x78] sm:$0xff]  ;;  %v1331_v5 = vld [vmem:[%s2204_s1 + $0x30] sm:$0xff]  ;;  %v657_v8 = vld [vmem:[%s2203_s2 + $0x8] sm:$0xff] }
   0x3   :  { %410 = vmatpush.bf16.msra.mxu0 %v1332_v3  ;;  %1548 = vmatpush.bf16.msra.mxu3 %v1332_v3  ;;  %v1624_v6 = vld [vmem:[%s2204_s1 + $0x70] sm:$0xff]  ;;  %v659_v7 = vld [vmem:[%s2203_s2 + $0x18] sm:$0xff]  ;;  %v1330_v9 = vld [vmem:[%s2204_s1 + $0x28] sm:$0xff] }
   0x4   :  { %499 = vmatpush.bf16.msra.mxu1 %v1615_v4  ;;  %1569 = vset.pattern.permute.xlu2 %v1571_v0  ;;  %v1639_v10 = vld [vmem:[%s2204_s1 + $0x68] sm:$0xff]  ;;  %v660_v11 = vld [vmem:[%s2203_s2 + $0x20] sm:$0xff]  ;;  %v663_v14 = vld [vmem:[%s2203_s2 + $0x38] sm:$0xff] }
   0x5   :  { %v1329_v12 = vld [vmem:[%s2204_s1 + $0x20] sm:$0xff]  ;;  %742 = vperm.xlu2 %1569, %v660_v11   ;;  %v662_v15 = vld [vmem:[%s2203_s2 + $0x30] sm:$0xff]  ;;  %v1328_v16 = vld [vmem:[%s2204_s1 + $0x18] sm:$0xff] }
   0x6   :  { %v1651_v13 = vld [vmem:[%s2204_s1 + $0x60] sm:$0xff]  ;;  %v1666_v17 = vld [vmem:[%s2204_s1 + $0x58] sm:$0xff]  ;;  %v661_v18 = vld [vmem:[%s2203_s2 + $0x28] sm:$0xff] }
   0x7   :  { %411 = vmatpush.bf16.msra.mxu0 %v1331_v5  ;;  %1549 = vmatpush.bf16.msra.mxu3 %v1331_v5  ;;  %v1327_v19 = vld [vmem:[%s2204_s1 + $0x10] sm:$0xff]  ;;  %v1343_v21 = vld [vmem:[%s2205_s0] sm:$0xff]   ;;  %v665_v24 = vld [vmem:[%s2203_s2 + $0x48] sm:$0xff] }
   0x8   :  { %500 = vmatpush.bf16.msra.mxu1 %v1624_v6  ;;  %v1678_v20 = vld [vmem:[%s2204_s1 + $0x50] sm:$0xff]  ;;  %v1686_v22 = vld [vmem:[%s2205_s0 + $0x60] sm:$0xff]   ;;  %v1326_v25 = vld [vmem:[%s2204_s1 + $0x8] sm:$0xff]  ;;  %v1344_v26 = vunpack.c.0.s8 %v1343_v21  ;;  %v1346_v27 = vunpack.c.2.s8 %v1343_v21  ;;  %v1345_v31 = vunpack.c.1.s8 %v1343_v21  ;;  %v1347_v32 = vunpack.c.3.s8 %v1343_v21 }
   0x9   :  { %v666_v23 = vld [vmem:[%s2203_s2 + $0x50] sm:$0xff]  ;;  %v1416_v28 = vunpack.c.0.s8 %v1686_v22  ;;  %v1418_v29 = vunpack.c.2.s8 %v1686_v22  ;;  %v1703_v30 = vld [vmem:[%s2204_s1 + $0x48] sm:$0xff]  ;;  %v664_v33 = vld [vmem:[%s2203_s2 + $0x40] sm:$0xff] }
   0xa   :  { %737 = vperm.xlu1 %1568, %v659_v7   ;;  %727 = vperm.xlu0 %1567, %v657_v8   ;;  %v1325_v34 = vld [vmem:[%s2204_s1] sm:$0xff]  ;;  %v154_v35 = vcvt.s32.f32 %v1344_v26  ;;  %v156_v36 = vcvt.s32.f32 %v1346_v27  ;;  %v155_v40 = vcvt.s32.f32 %v1345_v31  ;;  %v157_v41 = vcvt.s32.f32 %v1347_v32  ;;  %v669_v42 = vld [vmem:[%s2203_s2 + $0x68] sm:$0xff]  ;;  %v667_v47 = vld [vmem:[%s2203_s2 + $0x58] sm:$0xff] }
   0xb   :  { %412 = vmatpush.bf16.msra.mxu0 %v1330_v9  ;;  %1550 = vmatpush.bf16.msra.mxu3 %v1330_v9  ;;  %v202_v37 = vcvt.s32.f32 %v1416_v28  ;;  %v204_v38 = vcvt.s32.f32 %v1418_v29  ;;  %v1715_v39 = vld [vmem:[%s2204_s1 + $0x40] sm:$0xff]  ;;  %v1518_v48 = vld [vmem:[%s2205_s0 + $0x8] sm:$0xff]   ;;  %v671_v51 = vld [vmem:[%s2203_s2 + $0x78] sm:$0xff] }
   0xc   :  { %501 = vmatpush.bf16.msra.mxu1 %v1639_v10  ;;  %v668_v43 = vld [vmem:[%s2203_s2 + $0x60] sm:$0xff]  ;;  %v218_v44 = vpack.c.bf16 %v156_v36, %v154_v35  ;;  %v219_v46 = vpack.c.bf16 %v157_v41, %v155_v40  ;;  %v1734_v49 = vld [vmem:[%s2205_s0 + $0x68] sm:$0xff]   ;;  %v1350_v52 = vunpack.c.0.s8 %v1518_v48  ;;  %v1352_v53 = vunpack.c.2.s8 %v1518_v48  ;;  %v670_v58 = vld [vmem:[%s2203_s2 + $0x70] sm:$0xff] }
   0xd   :  { %747 = vperm.xlu2 %1569, %v661_v18   ;;  %v242_v45 = vpack.c.bf16 %v204_v38, %v202_v37  ;;  %v672_v50 = vld [vmem:[%s2203_s2 + $0x80] sm:$0xff]  ;;  %v1422_v54 = vunpack.c.0.s8 %v1734_v49  ;;  %v1424_v55 = vunpack.c.2.s8 %v1734_v49  ;;  %v1351_v56 = vunpack.c.1.s8 %v1518_v48  ;;  %v675_v1 = vld [vmem:[%s2203_s2 + $0x98] sm:$0xff]  ;;  %v674_v2 = vld [vmem:[%s2203_s2 + $0x90] sm:$0xff] }
   0xe   :  { %v1353_v57 = vunpack.c.3.s8 %v1518_v48  ;;  %v158_v59 = vcvt.s32.f32 %v1350_v52  ;;  %v160_v60 = vcvt.s32.f32 %v1352_v53  ;;  %v1519_v7 = vld [vmem:[%s2205_s0 + $0x10] sm:$0xff]   ;;  %v680_v26 = vld [vmem:[%s2203_s2 + $0xc0] sm:$0xff]  ;;  %v1520_v31 = vld [vmem:[%s2205_s0 + $0x18] sm:$0xff]  }
   0xf   :  { %413 = vmatpush.bf16.msra.mxu0 %v1329_v12  ;;  %1551 = vmatpush.bf16.msra.mxu3 %v1329_v12  ;;  %v206_v61 = vcvt.s32.f32 %v1422_v54  ;;  %v208_v62 = vcvt.s32.f32 %v1424_v55  ;;  %v159_v63 = vcvt.s32.f32 %v1351_v56  ;;  %v1766_v8 = vld [vmem:[%s2205_s0 + $0x70] sm:$0xff]   ;;  %v1356_v11 = vunpack.c.0.s8 %v1519_v7  ;;  %v1797_v32 = vld [vmem:[%s2205_s0 + $0x78] sm:$0xff]   ;;  %v684_v41 = vld [vmem:[%s2203_s2 + $0xe0] sm:$0xff] }
  0x10   :  { %502 = vmatpush.bf16.msra.mxu1 %v1651_v13  ;;  %v161_v0 = vcvt.s32.f32 %v1353_v57  ;;  %v220_v3 = vpack.c.bf16 %v160_v60, %v158_v59  ;;  %v678_v9 = vld [vmem:[%s2203_s2 + $0xb0] sm:$0xff]  ;;  %v1358_v12 = vunpack.c.2.s8 %v1519_v7  ;;  %v1362_v35 = vunpack.c.0.s8 %v1520_v31  ;;  %v687_v48 = vld [vmem:[%s2203_s2 + $0xf8] sm:$0xff]  ;;  %v1521_v55 = vld [vmem:[%s2205_s0 + $0x20] sm:$0xff]  }
  0x11   :  { %v162_v18 = vcvt.s32.f32 %v1356_v11  ;;  %v1364_v36 = vunpack.c.2.s8 %v1520_v31  ;;  %v1434_v37 = vunpack.c.0.s8 %v1797_v32  ;;  %v1436_v38 = vunpack.c.2.s8 %v1797_v32  ;;  %v683_v54 = vld [vmem:[%s2203_s2 + $0xd8] sm:$0xff] }
  0x12   :  { %757 = vperm.xlu1 %1568, %v663_v14   ;;  %752 = vperm.xlu0 %1567, %v662_v15   ;;  %v221_v5 = vpack.c.bf16 %v161_v0, %v159_v63  ;;  %v1430_v14 = vunpack.c.2.s8 %v1766_v8  ;;  %v1357_v15 = vunpack.c.1.s8 %v1519_v7  ;;  %v1365_v40 = vunpack.c.3.s8 %v1520_v31 }
  0x13   :  { %414 = vmatpush.bf16.msra.mxu0 %v1328_v16  ;;  %1552 = vmatpush.bf16.msra.mxu3 %v1328_v16  ;;  %v1359_v16 = vunpack.c.3.s8 %v1519_v7  ;;  %v1368_v56 = vunpack.c.0.s8 %v1521_v55  ;;  %v1370_v57 = vunpack.c.2.s8 %v1521_v55  ;;  %v1419_v59 = vunpack.c.3.s8 %v1686_v22  ;;  %v1522_v7 = vld [vmem:[%s2205_s0 + $0x28] sm:$0xff]  }
  0x14   :  { %503 = vmatpush.bf16.msra.mxu1 %v1666_v17  ;;  %v212_v21 = vcvt.s32.f32 %v1430_v14  ;;  %v1369_v60 = vunpack.c.1.s8 %v1521_v55  ;;  %v1425_v11 = vunpack.c.3.s8 %v1734_v49 }
  0x15   :  { %762 = vperm.xlu2 %1569, %v664_v33   ;;  %v682_v33 = vld [vmem:[%s2203_s2 + $0xd0] sm:$0xff]  ;;  %v172_v63 = vcvt.s32.f32 %v1370_v57 }
  0x17   :  { %415 = vmatpush.bf16.msra.mxu0 %v1327_v19  ;;  %1553 = vmatpush.bf16.msra.mxu3 %v1327_v19  ;;  %v164_v19 = vcvt.s32.f32 %v1358_v12  ;;  %v1375_v12 = vunpack.c.1.s8 %v1522_v7 }
  0x18   :  { %504 = vmatpush.bf16.msra.mxu1 %v1678_v20 }
  0x19   :  { %v222_v27 = vpack.c.bf16 %v164_v19, %v162_v18  ;;  %v175_v18 = vcvt.s32.f32 %v1375_v12 }
  0x1a   :  { %772 = vperm.xlu1 %1568, %v666_v23   ;;  %767 = vperm.xlu0 %1567, %v665_v24   ;;  %v163_v23 = vcvt.s32.f32 %v1357_v15  ;;  %v165_v24 = vcvt.s32.f32 %v1359_v16 }
  0x1b   :  { %416 = vmatpush.bf16.msra.mxu0 %v1326_v25  ;;  %1554 = vmatpush.bf16.msra.mxu3 %v1326_v25  ;;  %v681_v25 = vld [vmem:[%s2203_s2 + $0xc8] sm:$0xff] }
  0x1c   :  { %505 = vmatpush.bf16.msra.mxu1 %v1703_v30  ;;  %v223_v29 = vpack.c.bf16 %v165_v24, %v163_v23  ;;  %v1523_v24 = vld [vmem:[%s2205_s0 + $0x30] sm:$0xff]  }
  0x1d   :  { %777 = vperm.xlu2 %1569, %v667_v47   ;;  %v169_v47 = vcvt.s32.f32 %v1365_v40  ;;  %v1524_v40 = vld [vmem:[%s2205_s0 + $0x38] sm:$0xff]  }
  0x1f   :  { %417 = vmatpush.bf16.msra.mxu0 %v1325_v34  ;;  %1555 = vmatpush.bf16.msra.mxu3 %v1325_v34  ;;  %v685_v34 = vld [vmem:[%s2203_s2 + $0xe8] sm:$0xff] }
  0x20   :  { %506 = vmatpush.bf16.msra.mxu1 %v1715_v39 }
  0x22   :  { %787 = vperm.xlu1 %1568, %v669_v42   ;;  %782 = vperm.xlu0 %1567, %v668_v43   ;;  %v166_v42 = vcvt.s32.f32 %v1362_v35  ;;  %v168_v43 = vcvt.s32.f32 %v1364_v36 }
  0x23   :  { %1556 = vmatpush.bf16.msrb.mxu3 %v1615_v4  ;;  %418 = vmatmul.bf16.vlgmr.msra.gmra.mxu0 %v218_v44  ;;  %v244_v4 = vpack.c.bf16 %v208_v62, %v206_v61  ;;  %v214_v44 = vcvt.s32.f32 %v1434_v37  ;;  %v1371_v61 = vunpack.c.3.s8 %v1521_v55  ;;  %v170_v62 = vcvt.s32.f32 %v1368_v56  ;;  %v1525_v56 = vld [vmem:[%s2205_s0 + $0x40] sm:$0xff]  }
  0x24   :  { %478 = vmatmul.bf16.vlgmr.msra.gmra.mxu3 %v242_v45  ;;  %507 = vmatmul.bf16.vlgmr.msra.gmra.mxu1 %v219_v46  ;;  %v216_v45 = vcvt.s32.f32 %v1436_v38  ;;  %v1572_v37 = vmov 0.0   ;;  %v1392_v57 = vunpack.c.0.s8 %v1525_v56 }
  0x25   :  { %792 = vperm.xlu2 %1569, %v670_v58   ;;  %v1417_v58 = vunpack.c.1.s8 %v1686_v22  ;;  %v1376_v22 = vunpack.c.2.s8 %v1522_v7  ;;  %26 = vst.msk [vmem:[#allocation2] sm:$0xff] %vm25_vm0, %v1572_v37 }
  0x26   :  { %v248_v52 = vpack.c.bf16 %v216_v45, %v214_v44  ;;  %27 = vst.msk [vmem:[#allocation2 + $0x8] sm:$0xff] %vm25_vm0, %v1572_v37  ;;  %v1437_v44 = vunpack.c.3.s8 %v1797_v32  ;;  %v1387_v45 = vunpack.c.1.s8 %v1524_v40 }
  0x27   :  { %1557 = vmatpush.bf16.msrb.mxu3 %v1624_v6  ;;  %v673_v6 = vld [vmem:[%s2203_s2 + $0x88] sm:$0xff]  ;;  %v203_v0 = vcvt.s32.f32 %v1417_v58  ;;  %v176_v15 = vcvt.s32.f32 %v1376_v22  ;;  %28 = vst.msk [vmem:[#allocation2 + $0x10] sm:$0xff] %vm25_vm0, %v1572_v37  ;;  %v1394_v58 = vunpack.c.2.s8 %v1525_v56 }
  0x28   :  { %29 = vst.msk [vmem:[#allocation2 + $0x18] sm:$0xff] %vm25_vm0, %v1572_v37  ;;  %v1526_v22 = vld [vmem:[%s2205_s0 + $0x48] sm:$0xff]  }
  0x29   :  { %30 = vst.msk [vmem:[#allocation2 + $0x20] sm:$0xff] %vm25_vm0, %v1572_v37  ;;  %v1400_v12 = vunpack.c.2.s8 %v1526_v22 }
  0x2a   :  { %802 = vperm.xlu1 %1568, %v672_v50   ;;  %797 = vperm.xlu0 %1567, %v671_v51   ;;  %v686_v50 = vld [vmem:[%s2203_s2 + $0xf0] sm:$0xff]  ;;  %v224_v51 = vpack.c.bf16 %v168_v43, %v166_v42  ;;  %31 = vst.msk [vmem:[#allocation2 + $0x28] sm:$0xff] %vm25_vm0, %v1572_v37  ;;  %v1388_v42 = vunpack.c.2.s8 %v1524_v40  ;;  %v1435_v43 = vunpack.c.1.s8 %v1797_v32  ;;  %v183_v32 = vcvt.s32.f32 %v1387_v45 }
  0x2b   :  { %1558 = vmatpush.bf16.msrb.mxu3 %v1639_v10  ;;  %v677_v10 = vld [vmem:[%s2203_s2 + $0xa8] sm:$0xff]  ;;  %32 = vst.msk [vmem:[#allocation2 + $0x30] sm:$0xff] %vm25_vm0, %v1572_v37 }
  0x2c   :  { %33 = vst.msk [vmem:[#allocation2 + $0x38] sm:$0xff] %vm25_vm0, %v1572_v37 }
  0x2d   :  { %807 = vperm.xlu2 %1569, %v673_v6   ;;  %34 = vst.msk [vmem:[#allocation2 + $0x40] sm:$0xff] %vm25_vm0, %v1572_v37 }
  0x2e   :  { %35 = vst.msk [vmem:[#allocation2 + $0x48] sm:$0xff] %vm25_vm0, %v1572_v37 }
  0x2f   :  { %1559 = vmatpush.bf16.msrb.mxu3 %v1651_v13  ;;  %v1428_v13 = vunpack.c.0.s8 %v1766_v8  ;;  %36 = vst.msk [vmem:[#allocation2 + $0x50] sm:$0xff] %vm25_vm0, %v1572_v37 }
  0x30   :  { %37 = vst.msk [vmem:[#allocation2 + $0x58] sm:$0xff] %vm25_vm0, %v1572_v37 }
  0x31   :  { %38 = vst.msk [vmem:[#allocation2 + $0x60] sm:$0xff] %vm25_vm0, %v1572_v37 }
  0x32   :  { %817 = vperm.xlu1 %1568, %v675_v1   ;;  %812 = vperm.xlu0 %1567, %v674_v2   ;;  %v205_v1 = vcvt.s32.f32 %v1419_v59  ;;  %v171_v2 = vcvt.s32.f32 %v1369_v60  ;;  %39 = vst.msk [vmem:[#allocation2 + $0x68] sm:$0xff] %vm25_vm0, %v1572_v37  ;;  %v1393_v59 = vunpack.c.1.s8 %v1525_v56  ;;  %v1395_v60 = vunpack.c.3.s8 %v1525_v56 }
  0x33   :  { %1560 = vmatpush.bf16.msrb.mxu3 %v1666_v17  ;;  %423 = vmatmul.bf16.gmra.mxu0 %v220_v3  ;;  %v676_v17 = vld [vmem:[%s2203_s2 + $0xa0] sm:$0xff]  ;;  %v173_v3 = vcvt.s32.f32 %v1371_v61  ;;  %40 = vst.msk [vmem:[#allocation2 + $0x70] sm:$0xff] %vm25_vm0, %v1572_v37 }
  0x34   :  { %483 = vmatmul.bf16.gmra.mxu3 %v244_v4  ;;  %512 = vmatmul.bf16.gmra.mxu1 %v221_v5  ;;  %v226_v4 = vpack.c.bf16 %v172_v63, %v170_v62  ;;  %v243_v5 = vpack.c.bf16 %v205_v1, %v203_v0  ;;  %41 = vst.msk [vmem:[#allocation2 + $0x78] sm:$0xff] %vm25_vm0, %v1572_v37  ;;  %v1341_v61 = vld [vmem:[%s2207_s4] sm:$0xff]  ;;  %v186_v62 = vcvt.s32.f32 %v1392_v57  ;;  %v188_v63 = vcvt.s32.f32 %v1394_v58 }
  0x35   :  { %822 = vperm.xlu2 %1569, %v676_v17   ;;  %v227_v6 = vpack.c.bf16 %v173_v3, %v171_v2  ;;  %v209_v17 = vcvt.s32.f32 %v1425_v11  ;;  %42 = vst.msk [vmem:[#allocation2 + $0x80] sm:$0xff] %vm25_vm0, %v1572_v37  ;;  %1059 = vmatpush.bf16.msra.mxu2 %v1341_v61  ;;  %v187_v0 = vcvt.s32.f32 %v1393_v59  ;;  %v189_v1 = vcvt.s32.f32 %v1395_v60 }
  0x36   :  { %43 = vst.msk [vmem:[#allocation2 + $0x88] sm:$0xff] %vm25_vm0, %v1572_v37  ;;  %v234_v2 = vpack.c.bf16 %v188_v63, %v186_v62  ;;  %v1398_v11 = vunpack.c.0.s8 %v1526_v22 }
  0x37   :  { %1561 = vmatpush.bf16.msrb.mxu3 %v1678_v20  ;;  %v210_v20 = vcvt.s32.f32 %v1428_v13  ;;  %v1377_v13 = vunpack.c.3.s8 %v1522_v7  ;;  %44 = vst.msk [vmem:[#allocation2 + $0x90] sm:$0xff] %vm25_vm0, %v1572_v37 }
  0x38   :  { %45 = vst.msk [vmem:[#allocation2 + $0x98] sm:$0xff] %vm25_vm0, %v1572_v37 }
  0x39   :  { %v246_v28 = vpack.c.bf16 %v212_v21, %v210_v20  ;;  %v177_v19 = vcvt.s32.f32 %v1377_v13  ;;  %46 = vst.msk [vmem:[#allocation2 + $0xa0] sm:$0xff] %vm25_vm0, %v1572_v37 }
  0x3a   :  { %832 = vperm.xlu1 %1568, %v678_v9   ;;  %827 = vperm.xlu0 %1567, %v677_v10   ;;  %v1374_v9 = vunpack.c.0.s8 %v1522_v7  ;;  %v1423_v10 = vunpack.c.1.s8 %v1734_v49  ;;  %v1382_v49 = vunpack.c.2.s8 %v1523_v24  ;;  %47 = vst.msk [vmem:[#allocation2 + $0xa8] sm:$0xff] %vm25_vm0, %v1572_v37 }
  0x3b   :  { %1562 = vmatpush.bf16.msrb.mxu3 %v1703_v30  ;;  %v679_v30 = vld [vmem:[%s2203_s2 + $0xb8] sm:$0xff]  ;;  %v229_v23 = vpack.c.bf16 %v177_v19, %v175_v18  ;;  %48 = vst.msk [vmem:[#allocation2 + $0xb0] sm:$0xff] %vm25_vm0, %v1572_v37 }
  0x3c   :  { %v174_v14 = vcvt.s32.f32 %v1374_v9  ;;  %v207_v16 = vcvt.s32.f32 %v1423_v10  ;;  %49 = vst.msk [vmem:[#allocation2 + $0xb8] sm:$0xff] %vm25_vm0, %v1572_v37 }
  0x3d   :  { %837 = vperm.xlu2 %1569, %v679_v30   ;;  %50 = vst.msk [vmem:[#allocation2 + $0xc0] sm:$0xff] %vm25_vm0, %v1572_v37 }
  0x3e   :  { %v228_v20 = vpack.c.bf16 %v176_v15, %v174_v14  ;;  %v245_v21 = vpack.c.bf16 %v209_v17, %v207_v16  ;;  %51 = vst.msk [vmem:[#allocation2 + $0xc8] sm:$0xff] %vm25_vm0, %v1572_v37  ;;  %v1399_v14 = vunpack.c.1.s8 %v1526_v22  ;;  %v1401_v15 = vunpack.c.3.s8 %v1526_v22  ;;  %v251_v16 = vld [vmem:[#allocation2 + $0x8] sm:$0xff] }
  0x3f   :  { %1563 = vmatpush.bf16.msrb.mxu3 %v1715_v39  ;;  %v1363_v39 = vunpack.c.1.s8 %v1520_v31  ;;  %v180_v31 = vcvt.s32.f32 %v1382_v49  ;;  %52 = vst.msk [vmem:[#allocation2 + $0xd0] sm:$0xff] %vm25_vm0, %v1572_v37 }
  0x40   :  { %53 = vst.msk [vmem:[#allocation2 + $0xd8] sm:$0xff] %vm25_vm0, %v1572_v37 }
  0x41   :  { %v167_v46 = vcvt.s32.f32 %v1363_v39  ;;  %54 = vst.msk [vmem:[#allocation2 + $0xe0] sm:$0xff] %vm25_vm0, %v1572_v37 }
  0x42   :  { %847 = vperm.xlu1 %1568, %v681_v25   ;;  %842 = vperm.xlu0 %1567, %v680_v26   ;;  %v1380_v25 = vunpack.c.0.s8 %v1523_v24  ;;  %v1429_v26 = vunpack.c.1.s8 %v1766_v8  ;;  %55 = vst.msk [vmem:[#allocation2 + $0xe8] sm:$0xff] %vm25_vm0, %v1572_v37 }
  0x43   :  { %428 = vmatmul.bf16.gmra.mxu0 %v222_v27  ;;  %v225_v53 = vpack.c.bf16 %v169_v47, %v167_v46  ;;  %v1431_v27 = vunpack.c.3.s8 %v1766_v8  ;;  %v1389_v46 = vunpack.c.3.s8 %v1524_v40  ;;  %56 = vst.msk [vmem:[#allocation2 + $0xf0] sm:$0xff] %vm25_vm0, %v1572_v37  ;;  %1564 = vmatpush.bf16.msra.mxu3 %v1341_v61 }
  0x44   :  { %488 = vmatmul.bf16.gmra.mxu3 %v246_v28  ;;  %517 = vmatmul.bf16.gmra.mxu1 %v223_v29  ;;  %v1381_v28 = vunpack.c.1.s8 %v1523_v24  ;;  %v1383_v29 = vunpack.c.3.s8 %v1523_v24  ;;  %v178_v30 = vcvt.s32.f32 %v1380_v25  ;;  %57 = vst.msk [vmem:[#allocation2 + $0xf8] sm:$0xff] %vm25_vm0, %v1572_v37  ;;  %v191_v24 = vcvt.s32.f32 %v1399_v14  ;;  %v1527_v37 = vld [vmem:[%s2205_s0 + $0x50] sm:$0xff]  }
  0x45   :  { %862 = vperm.xlu2 %1569, %v684_v41   ;;  %v1386_v41 = vunpack.c.0.s8 %v1524_v40  ;;  %v193_v25 = vcvt.s32.f32 %v1401_v15 }
  0x46   :  { %v179_v35 = vcvt.s32.f32 %v1381_v28  ;;  %v181_v36 = vcvt.s32.f32 %v1383_v29  ;;  %v230_v8 = vpack.c.bf16 %v180_v31, %v178_v30  ;;  %v252_v30 = vld [vmem:[#allocation2 + $0x10] sm:$0xff] }
  0x47   :  { %v182_v47 = vcvt.s32.f32 %v1386_v41  ;;  %v237_v29 = vpack.c.bf16 %v193_v25, %v191_v24 }
  0x48   :  { %v231_v39 = vpack.c.bf16 %v181_v36, %v179_v35  ;;  %v1924_v35 = vld [vmem:[%s2206_s3] ss:$0 sm:$0xff] }
  0x4a   :  { %852 = vperm.xlu1 %1568, %v682_v33   ;;  %867 = vperm.xlu0 %1567, %v685_v34   ;;  %v211_v33 = vcvt.s32.f32 %v1429_v26  ;;  %v213_v34 = vcvt.s32.f32 %v1431_v27 }
  0x4c   :  { %v247_v38 = vpack.c.bf16 %v213_v34, %v211_v33 }
  0x4d   :  { %857 = vperm.xlu2 %1569, %v683_v54  }
  0x52   :  { %877 = vperm.xlu1 %1568, %v687_v48   ;;  %872 = vperm.xlu0 %1567, %v686_v50   ;;  %v184_v48 = vcvt.s32.f32 %v1388_v42  ;;  %v215_v50 = vcvt.s32.f32 %v1435_v43  ;;  %v1404_v42 = vunpack.c.0.s8 %v1527_v37  ;;  %v1406_v43 = vunpack.c.2.s8 %v1527_v37 }
  0x53   :  { %433 = vmatmul.bf16.gmra.mxu0 %v224_v51  ;;  %v217_v51 = vcvt.s32.f32 %v1437_v44 }
  0x54   :  { %493 = vmatmul.bf16.gmra.mxu3 %v248_v52  ;;  %522 = vmatmul.bf16.gmra.mxu1 %v225_v53  ;;  %v185_v52 = vcvt.s32.f32 %v1389_v46  ;;  %v232_v53 = vpack.c.bf16 %v184_v48, %v182_v47  ;;  %v1405_v46 = vunpack.c.1.s8 %v1527_v37  ;;  %v1407_v47 = vunpack.c.3.s8 %v1527_v37  ;;  %v253_v48 = vld [vmem:[#allocation2 + $0x18] sm:$0xff] }
  0x55   :  { %v249_v54 = vpack.c.bf16 %v217_v51, %v215_v50 }
  0x56   :  { %v233_v55 = vpack.c.bf16 %v185_v52, %v183_v32  ;;  %v195_v58 = vcvt.s32.f32 %v1405_v46  ;;  %v197_v59 = vcvt.s32.f32 %v1407_v47 }
  0x63   :  { %438 = vmatmul.bf16.gmra.mxu0 %v226_v4  ;;  %v235_v4 = vpack.c.bf16 %v189_v1, %v187_v0  ;;  %v239_v0 = vpack.c.bf16 %v197_v59, %v195_v58  ;;  %v254_v1 = vld [vmem:[#allocation2 + $0x20] sm:$0xff] }
  0x64   :  { %567 = vmatmul.bf16.vlgmr.msrb.gmra.mxu3 %v243_v5  ;;  %527 = vmatmul.bf16.gmra.mxu1 %v227_v6  ;;  %v250_v5 = vld [vmem:[#allocation2] sm:$0xff] }
  0x73   :  { %443 = vmatmul.bf16.gmra.mxu0 %v228_v20  ;;  %v190_v20 = vcvt.s32.f32 %v1398_v11 }
  0x74   :  { %572 = vmatmul.bf16.gmra.mxu3 %v245_v21  ;;  %532 = vmatmul.bf16.gmra.mxu1 %v229_v23  ;;  %v1915_v19 = vpop.permute.xlu0 %722  ;;  %v192_v21 = vcvt.s32.f32 %v1400_v12 }
  0x76   :  { %v236_v26 = vpack.c.bf16 %v192_v21, %v190_v20  ;;  %v255_v21 = vld [vmem:[#allocation2 + $0x28] sm:$0xff] }
  0x83   :  { %448 = vmatmul.bf16.gmra.mxu0 %v230_v8  ;;  %v1929_v8 = vpop.permute.xlu0 %727 }
  0x84   :  { %577 = vmatmul.bf16.gmra.mxu3 %v247_v38  ;;  %537 = vmatmul.bf16.gmra.mxu1 %v231_v39 }
  0x8b   :  { %v1964_v46 = vpop.permute.xlu0 %752 }
  0x93   :  { %453 = vmatmul.bf16.gmra.mxu0 %v232_v53  ;;  %v1937_v53 = vpop.permute.xlu1 %732 }
  0x94   :  { %582 = vmatmul.bf16.gmra.mxu3 %v249_v54  ;;  %542 = vmatmul.bf16.gmra.mxu1 %v233_v55  ;;  %v194_v54 = vcvt.s32.f32 %v1404_v42  ;;  %v196_v55 = vcvt.s32.f32 %v1406_v43  ;;  %v256_v42 = vld [vmem:[#allocation2 + $0x30] sm:$0xff] }
  0x96   :  { %v238_v61 = vpack.c.bf16 %v196_v55, %v194_v54 }
  0xa0   :  { %v419_v3 = vpop.f32.mrf.mxu0 }
  0xa1   :  { %v508_v6 = vpop.f32.mrf.mxu1 }
  0xa2   :  { %v509_v7 = vadd.f32 %v508_v6, %v419_v3  ;;  %v1528_v6 = vld [vmem:[%s2205_s0 + $0x58] sm:$0xff]  }
  0xa3   :  { %458 = vmatmul.bf16.gmra.mxu0 %v234_v2  ;;  %v1410_v14 = vunpack.c.0.s8 %v1528_v6  ;;  %v1412_v15 = vunpack.c.2.s8 %v1528_v6  ;;  %v1413_v20 = vunpack.c.3.s8 %v1528_v6 }
  0xa4   :  { %v588_v9 = vadd.f32 %v509_v7, %v250_v5  ;;  %547 = vmatmul.bf16.gmra.mxu1 %v235_v4  ;;  %v1947_v7 = vpop.permute.xlu1 %737 }
  0xa6   :  { %621 = vst.msk [vmem:[#allocation2] sm:$0xff] %vm25_vm0, %v588_v9  ;;  %v1949_v9 = vpop.permute.xlu2 %742 }
  0xa7   :  { %v1913_v10 = vpop.f32.mrf.mxu3 }
  0xa8   :  { %v421_v13 = vpop.f32.mrf.mxu0 }
  0xa9   :  { %v510_v17 = vpop.f32.mrf.mxu1 }
  0xaa   :  { %v511_v18 = vadd.f32 %v510_v17, %v421_v13 }
  0xac   :  { %v589_v23 = vadd.f32 %v511_v18, %v251_v16  ;;  %v1411_v18 = vunpack.c.1.s8 %v1528_v6  ;;  %v1974_v58 = vpop.permute.xlu1 %757 }
  0xad   :  { %v688_v27 = vld [vmem:[#allocation2] sm:$0xff] }
  0xae   :  { %622 = vst.msk [vmem:[#allocation2 + $0x8] sm:$0xff] %vm25_vm0, %v589_v23  ;;  %v880_v34 = vmul.f32 %v1915_v19, %v688_v27  ;;  %v198_v27 = vcvt.s32.f32 %v1410_v14 }
  0xaf   :  { %v1918_v49 = vpop.f32.mrf.mxu3 }
  0xb0   :  { %v424_v28 = vpop.f32.mrf.mxu0  ;;  %v916_v41 = vadd.f32 %v1924_v35, %v880_v34 }
  0xb1   :  { %v513_v31 = vpop.f32.mrf.mxu1 }
  0xb2   :  { %v514_v33 = vadd.f32 %v513_v31, %v424_v28  ;;  %v948_v32 = vmax.f32 %v916_v41, 0.0  ;;  %v200_v28 = vcvt.s32.f32 %v1412_v15  ;;  %v199_v31 = vcvt.s32.f32 %v1411_v18 }
  0xb3   :  { %463 = vmatmul.bf16.gmra.mxu0 %v236_v26 }
  0xb4   :  { %v590_v36 = vadd.f32 %v514_v33, %v252_v30  ;;  %552 = vmatmul.bf16.gmra.mxu1 %v237_v29  ;;  %v201_v33 = vcvt.s32.f32 %v1413_v20  ;;  %v240_v37 = vpack.c.bf16 %v200_v28, %v198_v27  ;;  %v1985_v14 = vpop.permute.xlu1 %772  ;;  %v259_v28 = vld [vmem:[#allocation2 + $0x48] sm:$0xff] }
  0xb5   :  { %v689_v38 = vld [vmem:[#allocation2 + $0x8] sm:$0xff] }
  0xb6   :  { %623 = vst.msk [vmem:[#allocation2 + $0x10] sm:$0xff] %vm25_vm0, %v590_v36  ;;  %v881_v40 = vmul.f32 %v1929_v8, %v689_v38  ;;  %v1961_v36 = vpop.permute.xlu2 %747  ;;  %v241_v41 = vpack.c.bf16 %v201_v33, %v199_v31 }
  0xb7   :  { %v1932_v39 = vpop.f32.mrf.mxu3 }
  0xb8   :  { %v426_v44 = vpop.f32.mrf.mxu0  ;;  %v917_v45 = vadd.f32 %v1924_v35, %v881_v40 }
  0xb9   :  { %v515_v50 = vpop.f32.mrf.mxu1 }
  0xba   :  { %v516_v51 = vadd.f32 %v515_v50, %v426_v44  ;;  %v949_v52 = vmax.f32 %v917_v45, 0.0 }
  0xbc   :  { %v591_v56 = vadd.f32 %v516_v51, %v253_v48  ;;  %v980_v57 = vpack.c.bf16 %v949_v52, %v948_v32 }
  0xbd   :  { %v690_v62 = vld [vmem:[#allocation2 + $0x10] sm:$0xff] }
  0xbe   :  { %624 = vst.msk [vmem:[#allocation2 + $0x18] sm:$0xff] %vm25_vm0, %v591_v56  ;;  %1309 = vmatmul.msk.bf16.vlgmr.msra.gmra.mxu2 %vm25_vm0, %v980_v57  ;;  %v882_v4 = vmul.f32 %v1937_v53, %v690_v62  ;;  %v1972_v55 = vpop.permute.xlu2 %762  ;;  %v257_v56 = vld [vmem:[#allocation2 + $0x38] sm:$0xff] }
  0xbf   :  { %v1941_v60 = vpop.f32.mrf.mxu3 }
  0xc0   :  { %v429_v63 = vpop.f32.mrf.mxu0  ;;  %v918_v13 = vadd.f32 %v1924_v35, %v882_v4 }
  0xc1   :  { %v518_v2 = vpop.f32.mrf.mxu1 }
  0xc2   :  { %v519_v3 = vadd.f32 %v518_v2, %v429_v63  ;;  %v950_v25 = vmax.f32 %v918_v13, 0.0 }
  0xc3   :  { %468 = vmatmul.bf16.gmra.mxu0 %v238_v61 }
  0xc4   :  { %v592_v5 = vadd.f32 %v519_v3, %v254_v1  ;;  %557 = vmatmul.bf16.gmra.mxu1 %v239_v0  ;;  %v1976_v1 = vpop.permute.xlu0 %767 }
  0xc5   :  { %v691_v22 = vld [vmem:[#allocation2 + $0x18] sm:$0xff] }
  0xc6   :  { %625 = vst.msk [vmem:[#allocation2 + $0x20] sm:$0xff] %vm25_vm0, %v592_v5  ;;  %v883_v12 = vmul.f32 %v1947_v7, %v691_v22  ;;  %v258_v5 = vld [vmem:[#allocation2 + $0x40] sm:$0xff]  ;;  %v1983_v13 = vpop.permute.xlu2 %777 }
  0xc7   :  { %v1952_v11 = vpop.f32.mrf.mxu3 }
  0xc8   :  { %v431_v16 = vpop.f32.mrf.mxu0  ;;  %v919_v17 = vadd.f32 %v1924_v35, %v883_v12 }
  0xc9   :  { %v520_v23 = vpop.f32.mrf.mxu1 }
  0xca   :  { %v521_v24 = vadd.f32 %v520_v23, %v431_v16  ;;  %v951_v26 = vmax.f32 %v919_v17, 0.0  ;;  %v274_v17 = vld [vmem:[#allocation2 + $0xc0] sm:$0xff] }
  0xcc   :  { %v593_v29 = vadd.f32 %v521_v24, %v255_v21  ;;  %v981_v30 = vpack.c.bf16 %v951_v26, %v950_v25  ;;  %v1991_v24 = vpop.permute.xlu0 %782 }
  0xcd   :  { %v692_v38 = vld [vmem:[#allocation2 + $0x20] sm:$0xff] }
  0xce   :  { %626 = vst.msk [vmem:[#allocation2 + $0x28] sm:$0xff] %vm25_vm0, %v593_v29  ;;  %1310 = vmatmul.msk.bf16.gmra.mxu2 %vm25_vm0, %v981_v30  ;;  %v884_v45 = vmul.f32 %v1949_v9, %v692_v38 }
  0xcf   :  { %v1959_v34 = vpop.f32.mrf.mxu3 }
  0xd0   :  { %v434_v40 = vpop.f32.mrf.mxu0  ;;  %v920_v32 = vadd.f32 %v1924_v35, %v884_v45 }
  0xd1   :  { %v523_v43 = vpop.f32.mrf.mxu1 }
  0xd2   :  { %v524_v44 = vadd.f32 %v523_v43, %v434_v40  ;;  %v952_v61 = vmax.f32 %v920_v32, 0.0  ;;  %v1995_v40 = vpop.permute.xlu2 %792 }
  0xd3   :  { %473 = vmatmul.bf16.gmra.mxu0 %v240_v37 }
  0xd4   :  { %v594_v47 = vadd.f32 %v524_v44, %v256_v42  ;;  %562 = vmatmul.bf16.gmra.mxu1 %v241_v41  ;;  %v1997_v41 = vpop.permute.xlu1 %787  ;;  %v2002_v32 = vpop.permute.xlu0 %797 }
  0xd5   :  { %v693_v48 = vld [vmem:[#allocation2 + $0x28] sm:$0xff] }
  0xd6   :  { %627 = vst.msk [vmem:[#allocation2 + $0x30] sm:$0xff] %vm25_vm0, %v594_v47  ;;  %v885_v51 = vmul.f32 %v1961_v36, %v693_v48  ;;  %v260_v48 = vld [vmem:[#allocation2 + $0x50] sm:$0xff] }
  0xd7   :  { %v1967_v50 = vpop.f32.mrf.mxu3 }
  0xd8   :  { %v436_v52 = vpop.f32.mrf.mxu0  ;;  %v921_v54 = vadd.f32 %v1924_v35, %v885_v51 }
  0xd9   :  { %v525_v57 = vpop.f32.mrf.mxu1 }
  0xda   :  { %v526_v59 = vadd.f32 %v525_v57, %v436_v52  ;;  %v953_v62 = vmax.f32 %v921_v54, 0.0 }
  0xdc   :  { %v595_v63 = vadd.f32 %v526_v59, %v257_v56  ;;  %v982_v0 = vpack.c.bf16 %v953_v62, %v952_v61  ;;  %v276_v59 = vld [vmem:[#allocation2 + $0xd0] sm:$0xff] }
  0xdd   :  { %v694_v3 = vld [vmem:[#allocation2 + $0x30] sm:$0xff] }
  0xde   :  { %628 = vst.msk [vmem:[#allocation2 + $0x38] sm:$0xff] %vm25_vm0, %v595_v63  ;;  %1311 = vmatmul.msk.bf16.gmra.mxu2 %vm25_vm0, %v982_v0  ;;  %v886_v12 = vmul.f32 %v1964_v46, %v694_v3  ;;  %v2009_v63 = vpop.permute.xlu2 %807  ;;  %v2012_v3 = vpop.permute.xlu1 %802 }
  0xdf   :  { %v1980_v2 = vpop.f32.mrf.mxu3 }
  0xe0   :  { %v439_v4 = vpop.f32.mrf.mxu0  ;;  %v922_v21 = vadd.f32 %v1924_v35, %v886_v12 }
  0xe1   :  { %v528_v6 = vpop.f32.mrf.mxu1 }
  0xe2   :  { %v529_v22 = vadd.f32 %v528_v6, %v439_v4  ;;  %v954_v31 = vmax.f32 %v922_v21, 0.0 }
  0xe4   :  { %v596_v15 = vadd.f32 %v529_v22, %v258_v5  ;;  %v261_v22 = vld [vmem:[#allocation2 + $0x58] sm:$0xff] }
  0xe5   :  { %v695_v16 = vld [vmem:[#allocation2 + $0x38] sm:$0xff] }
  0xe6   :  { %629 = vst.msk [vmem:[#allocation2 + $0x40] sm:$0xff] %vm25_vm0, %v596_v15  ;;  %v887_v20 = vmul.f32 %v1974_v58, %v695_v16 }
  0xe7   :  { %v568_v18 = vpop.f32.mrf.mxu3 }
  0xe8   :  { %v569_v23 = vadd.f32 %v568_v18, %v1913_v10  ;;  %v441_v25 = vpop.f32.mrf.mxu0  ;;  %v923_v26 = vadd.f32 %v1924_v35, %v887_v20  ;;  %v275_v10 = vld [vmem:[#allocation2 + $0xc8] sm:$0xff]  ;;  %v2016_v18 = vpop.permute.xlu0 %812 }
  0xe9   :  { %v530_v29 = vpop.f32.mrf.mxu1 }
  0xea   :  { %v612_v27 = vadd.f32 %v569_v23, %v274_v17  ;;  %v531_v30 = vadd.f32 %v530_v29, %v441_v25  ;;  %v955_v33 = vmax.f32 %v923_v26, 0.0 }
  0xec   :  { %645 = vst.msk [vmem:[#allocation2 + $0xc0] sm:$0xff] %vm25_vm0, %v612_v27  ;;  %v597_v37 = vadd.f32 %v531_v30, %v259_v28  ;;  %v983_v38 = vpack.c.bf16 %v955_v33, %v954_v31  ;;  %v2021_v28 = vpop.permute.xlu2 %822  ;;  %v262_v30 = vld [vmem:[#allocation2 + $0x60] sm:$0xff]  ;;  %v2023_v33 = vpop.permute.xlu1 %817 }
  0xed   :  { %v696_v44 = vld [vmem:[#allocation2 + $0x40] sm:$0xff] }
  0xee   :  { %630 = vst.msk [vmem:[#allocation2 + $0x48] sm:$0xff] %vm25_vm0, %v597_v37  ;;  %1312 = vmatmul.msk.bf16.gmra.mxu2 %vm25_vm0, %v983_v38  ;;  %v888_v54 = vmul.f32 %v1972_v55, %v696_v44 }
  0xef   :  { %v570_v42 = vpop.f32.mrf.mxu3 }
  0xf0   :  { %v571_v43 = vadd.f32 %v570_v42, %v1918_v49  ;;  %v444_v45 = vpop.f32.mrf.mxu0  ;;  %v924_v62 = vadd.f32 %v1924_v35, %v888_v54 }
  0xf1   :  { %v533_v51 = vpop.f32.mrf.mxu1 }
  0xf2   :  { %v613_v47 = vadd.f32 %v571_v43, %v275_v10  ;;  %v534_v52 = vadd.f32 %v533_v51, %v444_v45  ;;  %v956_v16 = vmax.f32 %v924_v62, 0.0  ;;  %v2027_v43 = vpop.permute.xlu0 %827 }
  0xf4   :  { %646 = vst.msk [vmem:[#allocation2 + $0xc8] sm:$0xff] %vm25_vm0, %v613_v47  ;;  %v598_v56 = vadd.f32 %v534_v52, %v260_v48  ;;  %v2034_v62 = vpop.permute.xlu2 %837 }
  0xf5   :  { %v697_v57 = vld [vmem:[#allocation2 + $0x48] sm:$0xff] }
  0xf6   :  { %631 = vst.msk [vmem:[#allocation2 + $0x50] sm:$0xff] %vm25_vm0, %v598_v56  ;;  %v889_v49 = vmul.f32 %v1976_v1, %v697_v57  ;;  %v263_v56 = vld [vmem:[#allocation2 + $0x68] sm:$0xff] }
  0xf7   :  { %v573_v61 = vpop.f32.mrf.mxu3 }
  0xf8   :  { %v574_v0 = vadd.f32 %v573_v61, %v1932_v39  ;;  %v446_v4 = vpop.f32.mrf.mxu0  ;;  %v925_v5 = vadd.f32 %v1924_v35, %v889_v49  ;;  %v277_v39 = vld [vmem:[#allocation2 + $0xd8] sm:$0xff] }
  0xf9   :  { %v535_v12 = vpop.f32.mrf.mxu1 }
  0xfa   :  { %v614_v6 = vadd.f32 %v574_v0, %v276_v59  ;;  %v536_v15 = vadd.f32 %v535_v12, %v446_v4  ;;  %v957_v17 = vmax.f32 %v925_v5, 0.0  ;;  %v2037_v0 = vpop.permute.xlu1 %832 }
  0xfc   :  { %647 = vst.msk [vmem:[#allocation2 + $0xd0] sm:$0xff] %vm25_vm0, %v614_v6  ;;  %v599_v20 = vadd.f32 %v536_v15, %v261_v22  ;;  %v984_v21 = vpack.c.bf16 %v957_v17, %v956_v16  ;;  %v2042_v15 = vpop.permute.xlu0 %842 }
  0xfd   :  { %v698_v26 = vld [vmem:[#allocation2 + $0x50] sm:$0xff] }
  0xfe   :  { %632 = vst.msk [vmem:[#allocation2 + $0x58] sm:$0xff] %vm25_vm0, %v599_v20  ;;  %1313 = vmatmul.msk.bf16.gmra.mxu2 %vm25_vm0, %v984_v21  ;;  %v890_v38 = vmul.f32 %v1985_v14, %v698_v26  ;;  %v264_v20 = vld [vmem:[#allocation2 + $0x70] sm:$0xff] }
  0xff   :  { %v575_v23 = vpop.f32.mrf.mxu3 }
 0x100   :  { %v576_v25 = vadd.f32 %v575_v23, %v1941_v60  ;;  %v449_v27 = vpop.f32.mrf.mxu0  ;;  %v278_v60 = vld [vmem:[#allocation2 + $0xe0] sm:$0xff]  ;;  %v926_v47 = vadd.f32 %v1924_v35, %v890_v38 }
 0x101   :  { %v538_v31 = vpop.f32.mrf.mxu1 }
 0x102   :  { %v615_v29 = vadd.f32 %v576_v25, %v277_v39  ;;  %v539_v37 = vadd.f32 %v538_v31, %v449_v27  ;;  %v958_v61 = vmax.f32 %v926_v47, 0.0  ;;  %v2046_v27 = vpop.permute.xlu2 %862  ;;  %v265_v47 = vld [vmem:[#allocation2 + $0x78] sm:$0xff] }
 0x104   :  { %648 = vst.msk [vmem:[#allocation2 + $0xd8] sm:$0xff] %vm25_vm0, %v615_v29  ;;  %v600_v10 = vadd.f32 %v539_v37, %v262_v30  ;;  %v2048_v30 = vpop.permute.xlu1 %847 }
 0x105   :  { %v699_v42 = vld [vmem:[#allocation2 + $0x58] sm:$0xff] }
 0x106   :  { %633 = vst.msk [vmem:[#allocation2 + $0x60] sm:$0xff] %vm25_vm0, %v600_v10  ;;  %v891_v45 = vmul.f32 %v1983_v13, %v699_v42 }
 0x107   :  { %v578_v44 = vpop.f32.mrf.mxu3 }
 0x108   :  { %v579_v48 = vadd.f32 %v578_v44, %v1952_v11  ;;  %v451_v51 = vpop.f32.mrf.mxu0  ;;  %v927_v52 = vadd.f32 %v1924_v35, %v891_v45  ;;  %v279_v11 = vld [vmem:[#allocation2 + $0xe8] sm:$0xff] }
 0x109   :  { %v540_v57 = vpop.f32.mrf.mxu1 }
 0x10a   :  { %v616_v54 = vadd.f32 %v579_v48, %v278_v60  ;;  %v541_v59 = vadd.f32 %v540_v57, %v451_v51  ;;  %v959_v49 = vmax.f32 %v927_v52, 0.0  ;;  %v2056_v51 = vpop.permute.xlu0 %867 }
 0x10c   :  { %649 = vst.msk [vmem:[#allocation2 + $0xe0] sm:$0xff] %vm25_vm0, %v616_v54  ;;  %v601_v4 = vadd.f32 %v541_v59, %v263_v56  ;;  %v985_v5 = vpack.c.bf16 %v959_v49, %v958_v61 }
 0x10d   :  { %v700_v12 = vld [vmem:[#allocation2 + $0x60] sm:$0xff] }
 0x10e   :  { %634 = vst.msk [vmem:[#allocation2 + $0x68] sm:$0xff] %vm25_vm0, %v601_v4  ;;  %1314 = vmatmul.msk.bf16.gmra.mxu2 %vm25_vm0, %v985_v5  ;;  %v892_v23 = vmul.f32 %v1991_v24, %v700_v12  ;;  %v281_v5 = vld [vmem:[#allocation2 + $0xf8] sm:$0xff] }
 0x10f   :  { %v580_v6 = vpop.f32.mrf.mxu3 }
 0x110   :  { %v581_v22 = vadd.f32 %v580_v6, %v1959_v34  ;;  %v454_v16 = vpop.f32.mrf.mxu0  ;;  %v280_v34 = vld [vmem:[#allocation2 + $0xf0] sm:$0xff]  ;;  %v928_v38 = vadd.f32 %v1924_v35, %v892_v23 }
 0x111   :  { %v543_v21 = vpop.f32.mrf.mxu1 }
 0x112   :  { %v617_v17 = vadd.f32 %v581_v22, %v279_v11  ;;  %v544_v39 = vadd.f32 %v543_v21, %v454_v16  ;;  %v960_v54 = vmax.f32 %v928_v38, 0.0 }
 0x113   :  { %v716_v26 = vld [vmem:[#allocation2 + $0xe0] sm:$0xff] }
 0x114   :  { %650 = vst.msk [vmem:[#allocation2 + $0xe8] sm:$0xff] %vm25_vm0, %v617_v17  ;;  %v602_v25 = vadd.f32 %v544_v39, %v264_v20  ;;  %v908_v42 = vmul.f32 %v2046_v27, %v716_v26  ;;  %v2065_v17 = vpop.permute.xlu1 %852  ;;  %v266_v39 = vld [vmem:[#allocation2 + $0x80] sm:$0xff] }
 0x115   :  { %v701_v29 = vld [vmem:[#allocation2 + $0x68] sm:$0xff] }
 0x116   :  { %635 = vst.msk [vmem:[#allocation2 + $0x70] sm:$0xff] %vm25_vm0, %v602_v25  ;;  %v893_v37 = vmul.f32 %v1997_v41, %v701_v29 }
 0x117   :  { %v583_v31 = vpop.f32.mrf.mxu3 }
 0x118   :  { %v584_v10 = vadd.f32 %v583_v31, %v1967_v50  ;;  %v456_v60 = vpop.f32.mrf.mxu0  ;;  %v929_v44 = vadd.f32 %v1924_v35, %v893_v37  ;;  %v944_v50 = vadd.f32 %v1924_v35, %v908_v42  ;;  %v2070_v37 = vpop.permute.xlu0 %872 }
 0x119   :  { %v545_v48 = vpop.f32.mrf.mxu1 }
 0x11a   :  { %v618_v45 = vadd.f32 %v584_v10, %v280_v34  ;;  %v546_v52 = vadd.f32 %v545_v48, %v456_v60  ;;  %v961_v56 = vmax.f32 %v929_v44, 0.0  ;;  %v976_v22 = vmax.f32 %v944_v50, 0.0 }
 0x11b   :  { %v717_v57 = vld [vmem:[#allocation2 + $0xe8] sm:$0xff] }
 0x11c   :  { %651 = vst.msk [vmem:[#allocation2 + $0xf0] sm:$0xff] %vm25_vm0, %v618_v45  ;;  %v909_v59 = vmul.f32 %v2056_v51, %v717_v57  ;;  %v603_v61 = vadd.f32 %v546_v52, %v265_v47  ;;  %v986_v49 = vpack.c.bf16 %v961_v56, %v960_v54  ;;  %v267_v45 = vld [vmem:[#allocation2 + $0x88] sm:$0xff]  ;;  %v2077_v48 = vpop.permute.xlu1 %877 }
 0x11d   :  { %v702_v16 = vld [vmem:[#allocation2 + $0x70] sm:$0xff] }
 0x11e   :  { %v945_v4 = vadd.f32 %v1924_v35, %v909_v59  ;;  %636 = vst.msk [vmem:[#allocation2 + $0x78] sm:$0xff] %vm25_vm0, %v603_v61  ;;  %1315 = vmatmul.msk.bf16.gmra.mxu2 %vm25_vm0, %v986_v49  ;;  %v894_v29 = vmul.f32 %v1995_v40, %v702_v16 }
 0x11f   :  { %v585_v11 = vpop.f32.mrf.mxu3 }
 0x120   :  { %v586_v6 = vadd.f32 %v585_v11, %v1980_v2  ;;  %v977_v12 = vmax.f32 %v945_v4, 0.0  ;;  %v459_v20 = vpop.f32.mrf.mxu0  ;;  %v930_v10 = vadd.f32 %v1924_v35, %v894_v29 }
 0x121   :  { %v548_v23 = vpop.f32.mrf.mxu1 }
 0x122   :  { %v619_v21 = vadd.f32 %v586_v6, %v281_v5  ;;  %v994_v25 = vpack.c.bf16 %v977_v12, %v976_v22  ;;  %v549_v26 = vadd.f32 %v548_v23, %v459_v20  ;;  %v962_v54 = vmax.f32 %v930_v10, 0.0  ;;  %v268_v12 = vld [vmem:[#allocation2 + $0x90] sm:$0xff] }
 0x123   :  { %v718_v31 = vld [vmem:[#allocation2 + $0xf0] sm:$0xff] }
 0x124   :  { %652 = vst.msk [vmem:[#allocation2 + $0xf8] sm:$0xff] %vm25_vm0, %v619_v21  ;;  %1323 = vmatmul.msk.bf16.vlgmr.msra.gmra.mxu3 %vm25_vm0, %v994_v25  ;;  %v604_v34 = vadd.f32 %v549_v26, %v266_v39  ;;  %v910_v42 = vmul.f32 %v2070_v37, %v718_v31 }
 0x125   :  { %v703_v2 = vld [vmem:[#allocation2 + $0x78] sm:$0xff] }
 0x126   :  { %637 = vst.msk [vmem:[#allocation2 + $0x80] sm:$0xff] %vm25_vm0, %v604_v34  ;;  %v895_v38 = vmul.f32 %v2002_v32, %v703_v2  ;;  %v946_v50 = vadd.f32 %v1924_v35, %v910_v42  ;;  %v269_v2 = vld [vmem:[#allocation2 + $0x98] sm:$0xff] }
 0x128   :  { %v461_v60 = vpop.f32.mrf.mxu0  ;;  %v931_v44 = vadd.f32 %v1924_v35, %v895_v38  ;;  %v978_v5 = vmax.f32 %v946_v50, 0.0 }
 0x129   :  { %v550_v47 = vpop.f32.mrf.mxu1 }
 0x12a   :  { %v551_v52 = vadd.f32 %v550_v47, %v461_v60  ;;  %v963_v56 = vmax.f32 %v931_v44, 0.0 }
 0x12b   :  { %v719_v57 = vld [vmem:[#allocation2 + $0xf8] sm:$0xff] }
 0x12c   :  { %v911_v59 = vmul.f32 %v2077_v48, %v719_v57  ;;  %v605_v61 = vadd.f32 %v551_v52, %v267_v45  ;;  %v987_v49 = vpack.c.bf16 %v963_v56, %v962_v54  ;;  %v270_v54 = vld [vmem:[#allocation2 + $0xa0] sm:$0xff] }
 0x12d   :  { %v704_v6 = vld [vmem:[#allocation2 + $0x80] sm:$0xff] }
 0x12e   :  { %v947_v4 = vadd.f32 %v1924_v35, %v911_v59  ;;  %638 = vst.msk [vmem:[#allocation2 + $0x88] sm:$0xff] %vm25_vm0, %v605_v61  ;;  %1316 = vmatmul.msk.bf16.gmra.mxu2 %vm25_vm0, %v987_v49  ;;  %v896_v39 = vmul.f32 %v2012_v3, %v704_v6 }
 0x130   :  { %v979_v11 = vmax.f32 %v947_v4, 0.0  ;;  %v464_v22 = vpop.f32.mrf.mxu0  ;;  %v932_v29 = vadd.f32 %v1924_v35, %v896_v39 }
 0x131   :  { %v553_v16 = vpop.f32.mrf.mxu1 }
 0x132   :  { %v995_v20 = vpack.c.bf16 %v979_v11, %v978_v5  ;;  %v554_v21 = vadd.f32 %v553_v16, %v464_v22  ;;  %v964_v42 = vmax.f32 %v932_v29, 0.0 }
 0x134   :  { %1324 = vmatmul.msk.bf16.gmra.mxu3 %vm25_vm0, %v995_v20  ;;  %v606_v23 = vadd.f32 %v554_v21, %v268_v12  ;;  %v271_v12 = vld [vmem:[#allocation2 + $0xa8] sm:$0xff] }
 0x135   :  { %v705_v25 = vld [vmem:[#allocation2 + $0x88] sm:$0xff] }
 0x136   :  { %639 = vst.msk [vmem:[#allocation2 + $0x90] sm:$0xff] %vm25_vm0, %v606_v23  ;;  %v897_v26 = vmul.f32 %v2009_v63, %v705_v25 }
 0x138   :  { %v466_v34 = vpop.f32.mrf.mxu0  ;;  %v933_v31 = vadd.f32 %v1924_v35, %v897_v26 }
 0x139   :  { %v555_v38 = vpop.f32.mrf.mxu1 }
 0x13a   :  { %v556_v10 = vadd.f32 %v555_v38, %v466_v34  ;;  %v965_v60 = vmax.f32 %v933_v31, 0.0 }
 0x13c   :  { %v607_v44 = vadd.f32 %v556_v10, %v269_v2  ;;  %v988_v45 = vpack.c.bf16 %v965_v60, %v964_v42  ;;  %v272_v2 = vld [vmem:[#allocation2 + $0xb0] sm:$0xff] }
 0x13d   :  { %v706_v47 = vld [vmem:[#allocation2 + $0x90] sm:$0xff] }
 0x13e   :  { %640 = vst.msk [vmem:[#allocation2 + $0x98] sm:$0xff] %vm25_vm0, %v607_v44  ;;  %1317 = vmatmul.msk.bf16.gmra.mxu2 %vm25_vm0, %v988_v45  ;;  %v898_v50 = vmul.f32 %v2016_v18, %v706_v47 }
 0x140   :  { %v469_v52 = vpop.f32.mrf.mxu0  ;;  %v934_v5 = vadd.f32 %v1924_v35, %v898_v50 }
 0x141   :  { %v558_v56 = vpop.f32.mrf.mxu1  ;;  %v1061_v57 = vpop.f32.mrf.mxu2 }
 0x142   :  { %v559_v59 = vadd.f32 %v558_v56, %v469_v52  ;;  %v1141_v22 = vmul.f32 %v1061_v57, %v1915_v19  ;;  %v966_v23 = vmax.f32 %v934_v5, 0.0  ;;  %v273_v57 = vld [vmem:[#allocation2 + $0xb8] sm:$0xff] }
 0x144   :  { %v608_v61 = vadd.f32 %v559_v59, %v270_v54 }
 0x145   :  { %v707_v49 = vld [vmem:[#allocation2 + $0x98] sm:$0xff] }
 0x146   :  { %641 = vst.msk [vmem:[#allocation2 + $0xa0] sm:$0xff] %vm25_vm0, %v608_v61  ;;  %v899_v4 = vmul.f32 %v2023_v33, %v707_v49 }
 0x148   :  { %v471_v11 = vpop.f32.mrf.mxu0  ;;  %v935_v6 = vadd.f32 %v1924_v35, %v899_v4 }
 0x149   :  { %v560_v16 = vpop.f32.mrf.mxu1  ;;  %v1063_v20 = vpop.f32.mrf.mxu2 }
 0x14a   :  { %v561_v21 = vadd.f32 %v560_v16, %v471_v11  ;;  %v1142_v39 = vmul.f32 %v1063_v20, %v1929_v8  ;;  %v967_v25 = vmax.f32 %v935_v6, 0.0 }
 0x14c   :  { %v609_v26 = vadd.f32 %v561_v21, %v271_v12  ;;  %v1441_v29 = vpack.c.bf16 %v1142_v39, %v1141_v22  ;;  %v989_v34 = vpack.c.bf16 %v967_v25, %v966_v23 }
 0x14d   :  { %v708_v19 = vld [vmem:[#allocation2 + $0xa0] sm:$0xff] }
 0x14e   :  { %642 = vst.msk [vmem:[#allocation2 + $0xa8] sm:$0xff] %vm25_vm0, %v609_v26  ;;  %1318 = vmatmul.msk.bf16.gmra.mxu2 %vm25_vm0, %v989_v34  ;;  %v900_v8 = vmul.f32 %v2021_v28, %v708_v19 }
 0x14f   :  { %1442 = vst [vmem:[%s2208_s5] sm:$0xff] %v1441_v29  }
 0x150   :  { %v474_v31 = vpop.f32.mrf.mxu0  ;;  %v936_v47 = vadd.f32 %v1924_v35, %v900_v8 }
 0x151   :  { %v563_v38 = vpop.f32.mrf.mxu1  ;;  %v1066_v10 = vpop.f32.mrf.mxu2 }
 0x152   :  { %v564_v42 = vadd.f32 %v563_v38, %v474_v31  ;;  %v1143_v56 = vmul.f32 %v1066_v10, %v1937_v53  ;;  %v968_v4 = vmax.f32 %v936_v47, 0.0  ;;  %v712_v38 = vld [vmem:[#allocation2 + $0xc0] sm:$0xff] }
 0x153   :  { %v904_v8 = vmul.f32 %v2042_v15, %v712_v38 }
 0x154   :  { %v610_v60 = vadd.f32 %v564_v42, %v272_v2  ;;  %v713_v2 = vld [vmem:[#allocation2 + $0xc8] sm:$0xff] }
 0x155   :  { %v709_v44 = vld [vmem:[#allocation2 + $0xa8] sm:$0xff]  ;;  %v905_v10 = vmul.f32 %v2048_v30, %v713_v2 }
 0x156   :  { %643 = vst.msk [vmem:[#allocation2 + $0xb0] sm:$0xff] %vm25_vm0, %v610_v60  ;;  %v901_v45 = vmul.f32 %v2027_v43, %v709_v44 }
 0x158   :  { %v476_v52 = vpop.f32.mrf.mxu0  ;;  %v937_v54 = vadd.f32 %v1924_v35, %v901_v45 }
 0x159   :  { %v565_v59 = vpop.f32.mrf.mxu1  ;;  %v1068_v50 = vpop.f32.mrf.mxu2 }
 0x15a   :  { %v566_v61 = vadd.f32 %v565_v59, %v476_v52  ;;  %v1144_v49 = vmul.f32 %v1068_v50, %v1947_v7  ;;  %v969_v5 = vmax.f32 %v937_v54, 0.0  ;;  %v2136_v59 = vpop.permute.xlu2 %857  ;;  %v714_v50 = vld [vmem:[#allocation2 + $0xd0] sm:$0xff] }
 0x15c   :  { %v611_v11 = vadd.f32 %v566_v61, %v273_v57  ;;  %v1446_v6 = vpack.c.bf16 %v1144_v49, %v1143_v56  ;;  %v990_v22 = vpack.c.bf16 %v969_v5, %v968_v4  ;;  %v715_v57 = vld [vmem:[#allocation2 + $0xd8] sm:$0xff] }
 0x15d   :  { %v710_v53 = vld [vmem:[#allocation2 + $0xb0] sm:$0xff]  ;;  %v907_v61 = vmul.f32 %v2136_v59, %v715_v57 }
 0x15e   :  { %644 = vst.msk [vmem:[#allocation2 + $0xb8] sm:$0xff] %vm25_vm0, %v611_v11  ;;  %1319 = vmatmul.msk.bf16.gmra.mxu2 %vm25_vm0, %v990_v22  ;;  %v902_v16 = vmul.f32 %v2037_v0, %v710_v53 }
 0x15f   :  { %1533 = vst [vmem:[%s2208_s5 + $0x8] sm:$0xff] %v1446_v6  }
 0x160   :  { %v938_v21 = vadd.f32 %v1924_v35, %v902_v16 }
 0x161   :  { %v1071_v12 = vpop.f32.mrf.mxu2 }
 0x162   :  { %v1145_v25 = vmul.f32 %v1071_v12, %v1949_v9  ;;  %v970_v29 = vmax.f32 %v938_v21, 0.0  ;;  %v941_v9 = vadd.f32 %v1924_v35, %v905_v10 }
 0x164   :  { %v973_v60 = vmax.f32 %v941_v9, 0.0 }
 0x165   :  { %v711_v20 = vld [vmem:[#allocation2 + $0xb8] sm:$0xff] }
 0x166   :  { %v903_v7 = vmul.f32 %v2034_v62, %v711_v20 }
 0x168   :  { %v939_v39 = vadd.f32 %v1924_v35, %v903_v7 }
 0x169   :  { %v1073_v23 = vpop.f32.mrf.mxu2 }
 0x16a   :  { %v1146_v26 = vmul.f32 %v1073_v23, %v1961_v36  ;;  %v971_v34 = vmax.f32 %v939_v39, 0.0  ;;  %v940_v36 = vadd.f32 %v1924_v35, %v904_v8 }
 0x16c   :  { %v1451_v19 = vpack.c.bf16 %v1146_v26, %v1145_v25  ;;  %v991_v31 = vpack.c.bf16 %v971_v34, %v970_v29  ;;  %v972_v52 = vmax.f32 %v940_v36, 0.0 }
 0x16e   :  { %1534 = vst [vmem:[%s2208_s5 + $0x10] sm:$0xff] %v1451_v19   ;;  %1320 = vmatmul.msk.bf16.gmra.mxu2 %vm25_vm0, %v991_v31  ;;  %v992_v56 = vpack.c.bf16 %v973_v60, %v972_v52 }
 0x171   :  { %v1076_v42 = vpop.f32.mrf.mxu2 }
 0x172   :  { %v1147_v45 = vmul.f32 %v1076_v42, %v1964_v46  ;;  %v906_v46 = vmul.f32 %v2065_v17, %v714_v50 }
 0x174   :  { %v942_v4 = vadd.f32 %v1924_v35, %v906_v46 }
 0x176   :  { %v974_v53 = vmax.f32 %v942_v4, 0.0 }
 0x179   :  { %v1078_v44 = vpop.f32.mrf.mxu2 }
 0x17a   :  { %v1148_v47 = vmul.f32 %v1078_v44, %v1974_v58  ;;  %v943_v58 = vadd.f32 %v1924_v35, %v907_v61 }
 0x17c   :  { %v1456_v54 = vpack.c.bf16 %v1148_v47, %v1147_v45  ;;  %v975_v5 = vmax.f32 %v943_v58, 0.0 }
 0x17e   :  { %1535 = vst [vmem:[%s2208_s5 + $0x18] sm:$0xff] %v1456_v54   ;;  %1321 = vmatmul.msk.bf16.gmra.mxu2 %vm25_vm0, %v992_v56  ;;  %v993_v16 = vpack.c.bf16 %v975_v5, %v974_v53 }
 0x181   :  { %v1081_v49 = vpop.f32.mrf.mxu2 }
 0x182   :  { %v1149_v6 = vmul.f32 %v1081_v49, %v1972_v55 }
 0x189   :  { %v1083_v11 = vpop.f32.mrf.mxu2 }
 0x18a   :  { %v1150_v22 = vmul.f32 %v1083_v11, %v1976_v1 }
 0x18c   :  { %v1461_v12 = vpack.c.bf16 %v1150_v22, %v1149_v6 }
 0x18e   :  { %1536 = vst [vmem:[%s2208_s5 + $0x20] sm:$0xff] %v1461_v12   ;;  %1322 = vmatmul.msk.bf16.gmra.mxu2 %vm25_vm0, %v993_v16 }
 0x191   :  { %v1086_v20 = vpop.f32.mrf.mxu2 }
 0x192   :  { %v1151_v21 = vmul.f32 %v1086_v20, %v1985_v14 }
 0x199   :  { %v1088_v7 = vpop.f32.mrf.mxu2 }
 0x19a   :  { %v1152_v35 = vmul.f32 %v1088_v7, %v1983_v13 }
 0x19c   :  { %v1466_v39 = vpack.c.bf16 %v1152_v35, %v1151_v21 }
 0x19e   :  { %1537 = vst [vmem:[%s2208_s5 + $0x28] sm:$0xff] %v1466_v39  }
 0x1a1   :  { %v1091_v55 = vpop.f32.mrf.mxu2 }
 0x1a2   :  { %v1153_v25 = vmul.f32 %v1091_v55, %v1991_v24 }
 0x1a7   :  { %v1131_v1 = vpop.f32.mrf.mxu3 }
 0x1a8   :  { %v1169_v13 = vmul.f32 %v1131_v1, %v2046_v27 }
 0x1a9   :  { %v1093_v23 = vpop.f32.mrf.mxu2 }
 0x1aa   :  { %v1154_v26 = vmul.f32 %v1093_v23, %v1997_v41 }
 0x1ac   :  { %v1471_v29 = vpack.c.bf16 %v1154_v26, %v1153_v25 }
 0x1ae   :  { %1538 = vst [vmem:[%s2208_s5 + $0x30] sm:$0xff] %v1471_v29  }
 0x1af   :  { %v1133_v14 = vpop.f32.mrf.mxu3 }
 0x1b0   :  { %v1170_v34 = vmul.f32 %v1133_v14, %v2056_v51 }
 0x1b1   :  { %v1096_v31 = vpop.f32.mrf.mxu2 }
 0x1b2   :  { %v1511_v19 = vpack.c.bf16 %v1170_v34, %v1169_v13  ;;  %v1155_v41 = vmul.f32 %v1096_v31, %v1995_v40 }
 0x1b4   :  { %1546 = vst [vmem:[%s2208_s5 + $0x70] sm:$0xff] %v1511_v19  }
 0x1b7   :  { %v1136_v2 = vpop.f32.mrf.mxu3 }
 0x1b8   :  { %v1171_v51 = vmul.f32 %v1136_v2, %v2070_v37 }
 0x1b9   :  { %v1098_v24 = vpop.f32.mrf.mxu2 }
 0x1ba   :  { %v1156_v38 = vmul.f32 %v1098_v24, %v2002_v32 }
 0x1bc   :  { %v1476_v10 = vpack.c.bf16 %v1156_v38, %v1155_v41 }
 0x1be   :  { %1539 = vst [vmem:[%s2208_s5 + $0x38] sm:$0xff] %v1476_v10  }
 0x1bf   :  { %v1138_v27 = vpop.f32.mrf.mxu3 }
 0x1c0   :  { %v1172_v42 = vmul.f32 %v1138_v27, %v2077_v48 }
 0x1c1   :  { %v1101_v9 = vpop.f32.mrf.mxu2 }
 0x1c2   :  { %v1516_v8 = vpack.c.bf16 %v1172_v42, %v1171_v51  ;;  %v1157_v40 = vmul.f32 %v1101_v9, %v2012_v3 }
 0x1c4   :  { %1547 = vst [vmem:[%s2208_s5 + $0x78] sm:$0xff] %v1516_v8  }
 0x1c9   :  { %v1103_v36 = vpop.f32.mrf.mxu2 }
 0x1ca   :  { %v1158_v32 = vmul.f32 %v1103_v36, %v2009_v63 }
 0x1cc   :  { %v1481_v60 = vpack.c.bf16 %v1158_v32, %v1157_v40 }
 0x1ce   :  { %1540 = vst [vmem:[%s2208_s5 + $0x40] sm:$0xff] %v1481_v60  }
 0x1d1   :  { %v1106_v44 = vpop.f32.mrf.mxu2 }
 0x1d2   :  { %v1159_v48 = vmul.f32 %v1106_v44, %v2016_v18 }
 0x1d9   :  { %v1108_v37 = vpop.f32.mrf.mxu2 }
 0x1da   :  { %v1160_v45 = vmul.f32 %v1108_v37, %v2023_v33 }
 0x1dc   :  { %v1486_v47 = vpack.c.bf16 %v1160_v45, %v1159_v48 }
 0x1de   :  { %1541 = vst [vmem:[%s2208_s5 + $0x48] sm:$0xff] %v1486_v47  }
 0x1e1   :  { %v1111_v52 = vpop.f32.mrf.mxu2 }
 0x1e2   :  { %v1161_v63 = vmul.f32 %v1111_v52, %v2021_v28 }
 0x1e9   :  { %v1113_v3 = vpop.f32.mrf.mxu2 }
 0x1ea   :  { %v1162_v54 = vmul.f32 %v1113_v3, %v2027_v43 }
 0x1ec   :  { %v1491_v56 = vpack.c.bf16 %v1162_v54, %v1161_v63 }
 0x1ee   :  { %1542 = vst [vmem:[%s2208_s5 + $0x50] sm:$0xff] %v1491_v56  }
 0x1f1   :  { %v1116_v57 = vpop.f32.mrf.mxu2 }
 0x1f2   :  { %v1163_v33 = vmul.f32 %v1116_v57, %v2037_v0 }
 0x1f9   :  { %v1118_v18 = vpop.f32.mrf.mxu2 }
 0x1fa   :  { %v1164_v50 = vmul.f32 %v1118_v18, %v2034_v62 }
 0x1fc   :  { %v1496_v61 = vpack.c.bf16 %v1164_v50, %v1163_v33 }
 0x1fe   :  { %1543 = vst [vmem:[%s2208_s5 + $0x58] sm:$0xff] %v1496_v61  }
 0x201   :  { %v1121_v49 = vpop.f32.mrf.mxu2 }
 0x202   :  { %v1165_v43 = vmul.f32 %v1121_v49, %v2042_v15 }
 0x209   :  { %v1123_v28 = vpop.f32.mrf.mxu2 }
 0x20a   :  { %v1166_v46 = vmul.f32 %v1123_v28, %v2048_v30 }
 0x20c   :  { %v1501_v58 = vpack.c.bf16 %v1166_v46, %v1165_v43 }
 0x20e   :  { %1544 = vst [vmem:[%s2208_s5 + $0x60] sm:$0xff] %v1501_v58  }
 0x211   :  { %v1126_v4 = vpop.f32.mrf.mxu2 }
 0x212   :  { %v1167_v62 = vmul.f32 %v1126_v4, %v2065_v17 }
 0x219   :  { %v1128_v0 = vpop.f32.mrf.mxu2 }
 0x21a   :  { %v1168_v5 = vmul.f32 %v1128_v0, %v2136_v59 }
 0x21c   :  { %v1506_v11 = vpack.c.bf16 %v1168_v5, %v1167_v62 }
 0x21e   :  { %1545 = vst [vmem:[%s2208_s5 + $0x68] sm:$0xff] %v1506_v11  }

// kernel: gcn_encoder.3
= control target key start
LH: loop header
LB: loop body
LE: loop exit
PB: predicated region body
PF: predicated region fallthrough
CT: control target
= control target key end

     0   :  { %v1190_v2 = vmov 0   ;;  %s1583_s1 = inlined_call_operand.vmem [shape: bf16[256,128], index: 1, kind: input, shape index: {}]   ;;  %s1584_s2 = inlined_call_operand.vmem [shape: f32[256,1], index: 2, kind: input, shape index: {}]   ;;  %s1585_s0 = inlined_call_operand.vmem [shape: s8[256,256], index: 0, kind: input, shape index: {}]   ;;  %s1586_s3 = inlined_call_operand.vmem [shape: f32[1,128], index: 3, kind: input, shape index: {}]   ;;  %s1587_s4 = inlined_call_operand.vmem [shape: f32[256,128], index: 4, kind: output, shape index: {}]  }
   0x1   :  { %v1049_v0 = vld [vmem:[%s1583_s1 + $0x38] sm:$0xff]  ;;  %1187 = vset.pattern.permute.xlu1 %v1190_v2  ;;  %1186 = vset.pattern.permute.xlu0 %v1190_v2  ;;  %v1048_v3 = vld [vmem:[%s1583_s1 + $0x30] sm:$0xff]  ;;  %v682_v5 = vld [vmem:[%s1584_s2] sm:$0xff] }
   0x2   :  { %v1057_v1 = vld [vmem:[%s1583_s1 + $0x78] sm:$0xff]  ;;  %1188 = vset.pattern.permute.xlu2 %v1190_v2  ;;  %405 = vmatpush.bf16.msra.mxu0 %v1049_v0  ;;  %v684_v4 = vld [vmem:[%s1584_s2 + $0x10] sm:$0xff]  ;;  %v1047_v7 = vld [vmem:[%s1583_s1 + $0x28] sm:$0xff] }
   0x3   :  { %1169 = vmatpush.bf16.msra.mxu2 %v1049_v0  ;;  %494 = vmatpush.bf16.msra.mxu1 %v1057_v1  ;;  %v1056_v6 = vld [vmem:[%s1583_s1 + $0x70] sm:$0xff]  ;;  %v1055_v8 = vld [vmem:[%s1583_s1 + $0x68] sm:$0xff]  ;;  %v686_v9 = vld [vmem:[%s1584_s2 + $0x20] sm:$0xff] }
   0x4   :  { %1177 = vmatpush.bf16.msra.mxu3 %v1057_v1  ;;  %726 = vperm.xlu1 %1187, %v684_v4   ;;  %v685_v10 = vld [vmem:[%s1584_s2 + $0x18] sm:$0xff]  ;;  %v683_v11 = vld [vmem:[%s1584_s2 + $0x8] sm:$0xff]  ;;  %v1046_v12 = vld [vmem:[%s1583_s1 + $0x20] sm:$0xff] }
   0x5   :  { %716 = vperm.xlu0 %1186, %v682_v5   ;;  %736 = vperm.xlu2 %1188, %v686_v9   ;;  %v1054_v13 = vld [vmem:[%s1583_s1 + $0x60] sm:$0xff]  ;;  %v1045_v14 = vld [vmem:[%s1583_s1 + $0x18] sm:$0xff]  ;;  %v1044_v16 = vld [vmem:[%s1583_s1 + $0x10] sm:$0xff] }
   0x6   :  { %406 = vmatpush.bf16.msra.mxu0 %v1048_v3  ;;  %v1053_v15 = vld [vmem:[%s1583_s1 + $0x58] sm:$0xff]  ;;  %v688_v18 = vld [vmem:[%s1584_s2 + $0x30] sm:$0xff]  ;;  %v1059_v19 = vld [vmem:[%s1585_s0] sm:$0xff]  }
   0x7   :  { %1170 = vmatpush.bf16.msra.mxu2 %v1048_v3  ;;  %495 = vmatpush.bf16.msra.mxu1 %v1056_v6  ;;  %v689_v17 = vld [vmem:[%s1584_s2 + $0x38] sm:$0xff]  ;;  %v1161_v20 = vld [vmem:[%s1585_s0 + $0x40] sm:$0xff]   ;;  %v687_v21 = vld [vmem:[%s1584_s2 + $0x28] sm:$0xff]  ;;  %v1060_v23 = vunpack.c.0.s8 %v1059_v19  ;;  %v1062_v24 = vunpack.c.2.s8 %v1059_v19  ;;  %v1061_v28 = vunpack.c.1.s8 %v1059_v19  ;;  %v1063_v29 = vunpack.c.3.s8 %v1059_v19 }
   0x8   :  { %1178 = vmatpush.bf16.msra.mxu3 %v1056_v6  ;;  %v1052_v22 = vld [vmem:[%s1583_s1 + $0x50] sm:$0xff]  ;;  %v1108_v25 = vunpack.c.0.s8 %v1161_v20  ;;  %v1110_v26 = vunpack.c.2.s8 %v1161_v20  ;;  %v1043_v27 = vld [vmem:[%s1583_s1 + $0x8] sm:$0xff]  ;;  %v1109_v30 = vunpack.c.1.s8 %v1161_v20  ;;  %v1111_v31 = vunpack.c.3.s8 %v1161_v20  ;;  %v1042_v39 = vld [vmem:[%s1583_s1] sm:$0xff] }
   0x9   :  { %v1051_v32 = vld [vmem:[%s1583_s1 + $0x48] sm:$0xff]  ;;  %v149_v33 = vcvt.s32.f32 %v1060_v23  ;;  %v151_v34 = vcvt.s32.f32 %v1062_v24  ;;  %v692_v37 = vld [vmem:[%s1584_s2 + $0x50] sm:$0xff]  ;;  %v150_v40 = vcvt.s32.f32 %v1061_v28  ;;  %v152_v41 = vcvt.s32.f32 %v1063_v29  ;;  %v690_v44 = vld [vmem:[%s1584_s2 + $0x40] sm:$0xff] }
   0xa   :  { %407 = vmatpush.bf16.msra.mxu0 %v1047_v7  ;;  %v181_v35 = vcvt.s32.f32 %v1108_v25  ;;  %v183_v36 = vcvt.s32.f32 %v1110_v26  ;;  %v691_v38 = vld [vmem:[%s1584_s2 + $0x48] sm:$0xff]  ;;  %v182_v42 = vcvt.s32.f32 %v1109_v30  ;;  %v184_v43 = vcvt.s32.f32 %v1111_v31  ;;  %v1050_v45 = vld [vmem:[%s1583_s1 + $0x40] sm:$0xff]  ;;  %v693_v54 = vld [vmem:[%s1584_s2 + $0x58] sm:$0xff] }
   0xb   :  { %1171 = vmatpush.bf16.msra.mxu2 %v1047_v7  ;;  %496 = vmatpush.bf16.msra.mxu1 %v1055_v8  ;;  %v213_v46 = vpack.c.bf16 %v151_v34, %v149_v33  ;;  %v214_v48 = vpack.c.bf16 %v152_v41, %v150_v40  ;;  %v695_v50 = vld [vmem:[%s1584_s2 + $0x68] sm:$0xff]  ;;  %v694_v51 = vld [vmem:[%s1584_s2 + $0x60] sm:$0xff]  ;;  %v697_v4 = vld [vmem:[%s1584_s2 + $0x78] sm:$0xff] }
   0xc   :  { %1179 = vmatpush.bf16.msra.mxu3 %v1055_v8  ;;  %731 = vperm.xlu1 %1187, %v685_v10   ;;  %v229_v47 = vpack.c.bf16 %v183_v36, %v181_v35  ;;  %v230_v49 = vpack.c.bf16 %v184_v43, %v182_v42  ;;  %v1154_v52 = vld [vmem:[%s1585_s0 + $0x8] sm:$0xff]   ;;  %v698_v3 = vld [vmem:[%s1584_s2 + $0x80] sm:$0xff]  ;;  %v696_v9 = vld [vmem:[%s1584_s2 + $0x70] sm:$0xff] }
   0xd   :  { %721 = vperm.xlu0 %1186, %v683_v11   ;;  %741 = vperm.xlu2 %1188, %v687_v21   ;;  %v1162_v53 = vld [vmem:[%s1585_s0 + $0x48] sm:$0xff]   ;;  %v1066_v55 = vunpack.c.0.s8 %v1154_v52  ;;  %v1068_v56 = vunpack.c.2.s8 %v1154_v52  ;;  %v1067_v59 = vunpack.c.1.s8 %v1154_v52  ;;  %v1069_v60 = vunpack.c.3.s8 %v1154_v52  ;;  %v704_v31 = vld [vmem:[%s1584_s2 + $0xb0] sm:$0xff]  ;;  %v706_v42 = vld [vmem:[%s1584_s2 + $0xc0] sm:$0xff] }
   0xe   :  { %408 = vmatpush.bf16.msra.mxu0 %v1046_v12  ;;  %v1114_v57 = vunpack.c.0.s8 %v1162_v53  ;;  %v1116_v58 = vunpack.c.2.s8 %v1162_v53  ;;  %v1115_v61 = vunpack.c.1.s8 %v1162_v53  ;;  %v1117_v62 = vunpack.c.3.s8 %v1162_v53  ;;  %v707_v41 = vld [vmem:[%s1584_s2 + $0xc8] sm:$0xff]  ;;  %v1156_v43 = vld [vmem:[%s1585_s0 + $0x18] sm:$0xff]  }
   0xf   :  { %1172 = vmatpush.bf16.msra.mxu2 %v1046_v12  ;;  %497 = vmatpush.bf16.msra.mxu1 %v1054_v13  ;;  %v153_v63 = vcvt.s32.f32 %v1066_v55  ;;  %v155_v0 = vcvt.s32.f32 %v1068_v56  ;;  %v154_v5 = vcvt.s32.f32 %v1067_v59  ;;  %v156_v6 = vcvt.s32.f32 %v1069_v60  ;;  %v710_v59 = vld [vmem:[%s1584_s2 + $0xe0] sm:$0xff]  ;;  %v709_v60 = vld [vmem:[%s1584_s2 + $0xd8] sm:$0xff] }
  0x10   :  { %1180 = vmatpush.bf16.msra.mxu3 %v1054_v13  ;;  %v185_v1 = vcvt.s32.f32 %v1114_v57  ;;  %v187_v2 = vcvt.s32.f32 %v1116_v58  ;;  %v186_v7 = vcvt.s32.f32 %v1115_v61  ;;  %v188_v8 = vcvt.s32.f32 %v1117_v62 }
  0x11   :  { %v215_v10 = vpack.c.bf16 %v155_v0, %v153_v63  ;;  %v216_v12 = vpack.c.bf16 %v156_v6, %v154_v5  ;;  %v713_v5 = vld [vmem:[%s1584_s2 + $0xf8] sm:$0xff]  ;;  %v712_v6 = vld [vmem:[%s1584_s2 + $0xf0] sm:$0xff] }
  0x12   :  { %409 = vmatpush.bf16.msra.mxu0 %v1045_v14  ;;  %v231_v11 = vpack.c.bf16 %v187_v2, %v185_v1  ;;  %v232_v13 = vpack.c.bf16 %v188_v8, %v186_v7  ;;  %v1157_v7 = vld [vmem:[%s1585_s0 + $0x20] sm:$0xff]  }
  0x13   :  { %1173 = vmatpush.bf16.msra.mxu2 %v1045_v14  ;;  %498 = vmatpush.bf16.msra.mxu1 %v1053_v15  ;;  %v701_v14 = vld [vmem:[%s1584_s2 + $0x98] sm:$0xff]  ;;  %v1165_v8 = vld [vmem:[%s1585_s0 + $0x60] sm:$0xff]  }
  0x14   :  { %1181 = vmatpush.bf16.msra.mxu3 %v1053_v15  ;;  %751 = vperm.xlu1 %1187, %v689_v17   ;;  %v700_v15 = vld [vmem:[%s1584_s2 + $0x90] sm:$0xff] }
  0x15   :  { %746 = vperm.xlu0 %1186, %v688_v18   ;;  %756 = vperm.xlu2 %1188, %v690_v44   ;;  %v1163_v17 = vld [vmem:[%s1585_s0 + $0x50] sm:$0xff]   ;;  %v699_v18 = vld [vmem:[%s1584_s2 + $0x88] sm:$0xff]  ;;  %v1164_v44 = vld [vmem:[%s1585_s0 + $0x58] sm:$0xff]  }
  0x16   :  { %410 = vmatpush.bf16.msra.mxu0 %v1044_v16  ;;  %v1120_v21 = vunpack.c.0.s8 %v1163_v17  ;;  %v1121_v25 = vunpack.c.1.s8 %v1163_v17  ;;  %v1123_v26 = vunpack.c.3.s8 %v1163_v17  ;;  %v1127_v52 = vunpack.c.1.s8 %v1164_v44 }
  0x17   :  { %1174 = vmatpush.bf16.msra.mxu2 %v1044_v16  ;;  %499 = vmatpush.bf16.msra.mxu1 %v1052_v22  ;;  %v1155_v16 = vld [vmem:[%s1585_s0 + $0x10] sm:$0xff]   ;;  %v1129_v53 = vunpack.c.3.s8 %v1164_v44 }
  0x18   :  { %1182 = vmatpush.bf16.msra.mxu3 %v1052_v22  ;;  %v1072_v19 = vunpack.c.0.s8 %v1155_v16  ;;  %v1074_v20 = vunpack.c.2.s8 %v1155_v16  ;;  %v1122_v22 = vunpack.c.2.s8 %v1163_v17  ;;  %v1073_v23 = vunpack.c.1.s8 %v1155_v16 }
  0x19   :  { %v1075_v24 = vunpack.c.3.s8 %v1155_v16  ;;  %v189_v29 = vcvt.s32.f32 %v1120_v21  ;;  %v190_v35 = vcvt.s32.f32 %v1121_v25  ;;  %v192_v36 = vcvt.s32.f32 %v1123_v26 }
  0x1a   :  { %411 = vmatpush.bf16.msra.mxu0 %v1043_v27  ;;  %v159_v28 = vcvt.s32.f32 %v1074_v20  ;;  %v191_v30 = vcvt.s32.f32 %v1122_v22  ;;  %v158_v33 = vcvt.s32.f32 %v1073_v23  ;;  %v194_v63 = vcvt.s32.f32 %v1127_v52 }
  0x1b   :  { %1175 = vmatpush.bf16.msra.mxu2 %v1043_v27  ;;  %500 = vmatpush.bf16.msra.mxu1 %v1051_v32  ;;  %v157_v27 = vcvt.s32.f32 %v1072_v19  ;;  %v160_v34 = vcvt.s32.f32 %v1075_v24  ;;  %v234_v40 = vpack.c.bf16 %v192_v36, %v190_v35  ;;  %v196_v0 = vcvt.s32.f32 %v1129_v53  ;;  %v1159_v53 = vld [vmem:[%s1585_s0 + $0x30] sm:$0xff]  }
  0x1c   :  { %1183 = vmatpush.bf16.msra.mxu3 %v1051_v32  ;;  %766 = vperm.xlu1 %1187, %v692_v37   ;;  %v703_v32 = vld [vmem:[%s1584_s2 + $0xa8] sm:$0xff]  ;;  %v1133_v16 = vunpack.c.1.s8 %v1165_v8  ;;  %v1135_v17 = vunpack.c.3.s8 %v1165_v8 }
  0x1d   :  { %761 = vperm.xlu0 %1186, %v691_v38   ;;  %771 = vperm.xlu2 %1188, %v693_v54   ;;  %v217_v37 = vpack.c.bf16 %v159_v28, %v157_v27  ;;  %v233_v38 = vpack.c.bf16 %v191_v30, %v189_v29  ;;  %v705_v54 = vld [vmem:[%s1584_s2 + $0xb8] sm:$0xff] }
  0x1e   :  { %412 = vmatpush.bf16.msra.mxu0 %v1042_v39  ;;  %v198_v25 = vcvt.s32.f32 %v1133_v16  ;;  %v200_v26 = vcvt.s32.f32 %v1135_v17  ;;  %v1168_v16 = vld [vmem:[%s1585_s0 + $0x78] sm:$0xff]  }
  0x1f   :  { %1176 = vmatpush.bf16.msra.mxu2 %v1042_v39  ;;  %501 = vmatpush.bf16.msra.mxu1 %v1050_v45  ;;  %v218_v39 = vpack.c.bf16 %v160_v34, %v158_v33 }
  0x20   :  { %1184 = vmatpush.bf16.msra.mxu3 %v1050_v45  ;;  %v702_v45 = vld [vmem:[%s1584_s2 + $0xa0] sm:$0xff]  ;;  %v238_v30 = vpack.c.bf16 %v200_v26, %v198_v25  ;;  %v1151_v25 = vunpack.c.1.s8 %v1168_v16  ;;  %v1153_v26 = vunpack.c.3.s8 %v1168_v16 }
  0x21   :  { %413 = vmatmul.bf16.vlgmr.msra.gmra.mxu0 %v213_v46  ;;  %v1078_v46 = vunpack.c.0.s8 %v1156_v43 }
  0x22   :  { %453 = vmatmul.bf16.vlgmr.msra.gmra.mxu2 %v229_v47  ;;  %502 = vmatmul.bf16.vlgmr.msra.gmra.mxu1 %v214_v48  ;;  %v1080_v47 = vunpack.c.2.s8 %v1156_v43  ;;  %v1126_v48 = vunpack.c.0.s8 %v1164_v44 }
  0x23   :  { %542 = vmatmul.bf16.vlgmr.msra.gmra.mxu3 %v230_v49  ;;  %v1128_v49 = vunpack.c.2.s8 %v1164_v44  ;;  %v161_v55 = vcvt.s32.f32 %v1078_v46 }
  0x24   :  { %781 = vperm.xlu1 %1187, %v695_v50   ;;  %v1079_v50 = vunpack.c.1.s8 %v1156_v43  ;;  %v163_v56 = vcvt.s32.f32 %v1080_v47  ;;  %v193_v57 = vcvt.s32.f32 %v1126_v48 }
  0x25   :  { %776 = vperm.xlu0 %1186, %v694_v51   ;;  %786 = vperm.xlu2 %1188, %v696_v9   ;;  %v1081_v51 = vunpack.c.3.s8 %v1156_v43  ;;  %v195_v58 = vcvt.s32.f32 %v1128_v49  ;;  %v708_v9 = vld [vmem:[%s1584_s2 + $0xd0] sm:$0xff] }
  0x26   :  { %v162_v61 = vcvt.s32.f32 %v1079_v50  ;;  %v219_v1 = vpack.c.bf16 %v163_v56, %v161_v55  ;;  %v1096_v55 = vunpack.c.0.s8 %v1159_v53  ;;  %v1098_v56 = vunpack.c.2.s8 %v1159_v53 }
  0x27   :  { %v164_v62 = vcvt.s32.f32 %v1081_v51  ;;  %v235_v2 = vpack.c.bf16 %v195_v58, %v193_v57 }
  0x2c   :  { %796 = vperm.xlu1 %1187, %v698_v3   ;;  %v220_v3 = vpack.c.bf16 %v164_v62, %v162_v61  ;;  %v1099_v61 = vunpack.c.3.s8 %v1159_v53 }
  0x2d   :  { %791 = vperm.xlu0 %1186, %v697_v4   ;;  %801 = vperm.xlu2 %1188, %v699_v18   ;;  %v236_v4 = vpack.c.bf16 %v196_v0, %v194_v63  ;;  %v711_v18 = vld [vmem:[%s1584_s2 + $0xe8] sm:$0xff]  ;;  %v173_v0 = vcvt.s32.f32 %v1096_v55 }
  0x31   :  { %418 = vmatmul.bf16.gmra.mxu0 %v215_v10  ;;  %v1084_v10 = vunpack.c.0.s8 %v1157_v7 }
  0x32   :  { %458 = vmatmul.bf16.gmra.mxu2 %v231_v11  ;;  %507 = vmatmul.bf16.gmra.mxu1 %v216_v12  ;;  %v1086_v11 = vunpack.c.2.s8 %v1157_v7  ;;  %v1132_v12 = vunpack.c.0.s8 %v1165_v8 }
  0x33   :  { %547 = vmatmul.bf16.gmra.mxu3 %v232_v13  ;;  %v1134_v13 = vunpack.c.2.s8 %v1165_v8  ;;  %v165_v19 = vcvt.s32.f32 %v1084_v10 }
  0x34   :  { %811 = vperm.xlu1 %1187, %v701_v14   ;;  %v1085_v14 = vunpack.c.1.s8 %v1157_v7  ;;  %v167_v20 = vcvt.s32.f32 %v1086_v11  ;;  %v197_v21 = vcvt.s32.f32 %v1132_v12 }
  0x35   :  { %806 = vperm.xlu0 %1186, %v700_v15   ;;  %816 = vperm.xlu2 %1188, %v702_v45   ;;  %v1087_v15 = vunpack.c.3.s8 %v1157_v7  ;;  %v199_v22 = vcvt.s32.f32 %v1134_v13 }
  0x36   :  { %v166_v23 = vcvt.s32.f32 %v1085_v14  ;;  %v221_v27 = vpack.c.bf16 %v167_v20, %v165_v19 }
  0x37   :  { %v168_v24 = vcvt.s32.f32 %v1087_v15  ;;  %v237_v28 = vpack.c.bf16 %v199_v22, %v197_v21  ;;  %v1160_v15 = vld [vmem:[%s1585_s0 + $0x38] sm:$0xff]   ;;  %v1150_v21 = vunpack.c.0.s8 %v1168_v16  ;;  %v1152_v22 = vunpack.c.2.s8 %v1168_v16 }
  0x38   :  { %v1102_v19 = vunpack.c.0.s8 %v1160_v15  ;;  %v1104_v20 = vunpack.c.2.s8 %v1160_v15 }
  0x39   :  { %v222_v29 = vpack.c.bf16 %v168_v24, %v166_v23  ;;  %v1103_v23 = vunpack.c.1.s8 %v1160_v15  ;;  %v1105_v24 = vunpack.c.3.s8 %v1160_v15 }
  0x3c   :  { %826 = vperm.xlu1 %1187, %v704_v31   ;;  %v1158_v31 = vld [vmem:[%s1585_s0 + $0x28] sm:$0xff]  }
  0x3d   :  { %821 = vperm.xlu0 %1186, %v703_v32   ;;  %831 = vperm.xlu2 %1188, %v705_v54   ;;  %v1166_v32 = vld [vmem:[%s1585_s0 + $0x68] sm:$0xff]   ;;  %v1090_v33 = vunpack.c.0.s8 %v1158_v31  ;;  %v1092_v34 = vunpack.c.2.s8 %v1158_v31  ;;  %v1167_v54 = vld [vmem:[%s1585_s0 + $0x70] sm:$0xff]  }
  0x3e   :  { %v1138_v35 = vunpack.c.0.s8 %v1166_v32  ;;  %v1140_v36 = vunpack.c.2.s8 %v1166_v32  ;;  %v1144_v57 = vunpack.c.0.s8 %v1167_v54  ;;  %v1146_v58 = vunpack.c.2.s8 %v1167_v54 }
  0x3f   :  { %v1145_v62 = vunpack.c.1.s8 %v1167_v54  ;;  %v1147_v63 = vunpack.c.3.s8 %v1167_v54 }
  0x40   :  { %v201_v43 = vcvt.s32.f32 %v1138_v35  ;;  %v203_v44 = vcvt.s32.f32 %v1140_v36  ;;  %v212_v35 = vcvt.s32.f32 %v1153_v26 }
  0x41   :  { %423 = vmatmul.bf16.gmra.mxu0 %v217_v37  ;;  %v1091_v37 = vunpack.c.1.s8 %v1158_v31  ;;  %v208_v7 = vcvt.s32.f32 %v1147_v63 }
  0x42   :  { %463 = vmatmul.bf16.gmra.mxu2 %v233_v38  ;;  %512 = vmatmul.bf16.gmra.mxu1 %v218_v39  ;;  %v1093_v38 = vunpack.c.3.s8 %v1158_v31  ;;  %v1139_v39 = vunpack.c.1.s8 %v1166_v32  ;;  %v239_v50 = vpack.c.bf16 %v203_v44, %v201_v43  ;;  %v211_v31 = vcvt.s32.f32 %v1152_v22 }
  0x43   :  { %552 = vmatmul.bf16.gmra.mxu3 %v234_v40  ;;  %v1141_v40 = vunpack.c.3.s8 %v1166_v32  ;;  %v170_v45 = vcvt.s32.f32 %v1091_v37  ;;  %v178_v32 = vcvt.s32.f32 %v1103_v23 }
  0x44   :  { %841 = vperm.xlu1 %1187, %v707_v41   ;;  %v169_v41 = vcvt.s32.f32 %v1090_v33  ;;  %v172_v46 = vcvt.s32.f32 %v1093_v38  ;;  %v202_v47 = vcvt.s32.f32 %v1139_v39  ;;  %v180_v33 = vcvt.s32.f32 %v1105_v24 }
  0x45   :  { %836 = vperm.xlu0 %1186, %v706_v42   ;;  %846 = vperm.xlu2 %1188, %v708_v9   ;;  %v171_v42 = vcvt.s32.f32 %v1092_v34  ;;  %v204_v48 = vcvt.s32.f32 %v1141_v40  ;;  %v210_v34 = vcvt.s32.f32 %v1151_v25 }
  0x46   :  { %v224_v51 = vpack.c.bf16 %v172_v46, %v170_v45  ;;  %v228_v38 = vpack.c.bf16 %v180_v33, %v178_v32 }
  0x47   :  { %v223_v49 = vpack.c.bf16 %v171_v42, %v169_v41  ;;  %v240_v52 = vpack.c.bf16 %v204_v48, %v202_v47  ;;  %v244_v39 = vpack.c.bf16 %v212_v35, %v210_v34 }
  0x4c   :  { %856 = vperm.xlu1 %1187, %v710_v59  }
  0x4d   :  { %851 = vperm.xlu0 %1186, %v709_v60   ;;  %861 = vperm.xlu2 %1188, %v711_v18   ;;  %v1097_v60 = vunpack.c.1.s8 %v1159_v53 }
  0x51   :  { %428 = vmatmul.bf16.gmra.mxu0 %v219_v1  ;;  %v175_v1 = vcvt.s32.f32 %v1098_v56 }
  0x52   :  { %468 = vmatmul.bf16.gmra.mxu2 %v235_v2  ;;  %517 = vmatmul.bf16.gmra.mxu1 %v220_v3  ;;  %v205_v2 = vcvt.s32.f32 %v1144_v57  ;;  %v207_v3 = vcvt.s32.f32 %v1146_v58 }
  0x53   :  { %557 = vmatmul.bf16.gmra.mxu3 %v236_v4  ;;  %v174_v4 = vcvt.s32.f32 %v1097_v60  ;;  %v225_v10 = vpack.c.bf16 %v175_v1, %v173_v0 }
  0x54   :  { %871 = vperm.xlu1 %1187, %v713_v5   ;;  %v176_v5 = vcvt.s32.f32 %v1099_v61  ;;  %v241_v11 = vpack.c.bf16 %v207_v3, %v205_v2 }
  0x55   :  { %866 = vperm.xlu0 %1186, %v712_v6   ;;  %v206_v6 = vcvt.s32.f32 %v1145_v62 }
  0x56   :  { %v226_v12 = vpack.c.bf16 %v176_v5, %v174_v4 }
  0x57   :  { %v242_v13 = vpack.c.bf16 %v208_v7, %v206_v6 }
  0x5f   :  { %v1404_v8 = vpop.permute.xlu2 %736 }
  0x61   :  { %433 = vmatmul.bf16.gmra.mxu0 %v221_v27 }
  0x62   :  { %473 = vmatmul.bf16.gmra.mxu2 %v237_v28  ;;  %522 = vmatmul.bf16.gmra.mxu1 %v222_v29  ;;  %v177_v28 = vcvt.s32.f32 %v1102_v19  ;;  %v179_v29 = vcvt.s32.f32 %v1104_v20 }
  0x63   :  { %562 = vmatmul.bf16.gmra.mxu3 %v238_v30  ;;  %v209_v30 = vcvt.s32.f32 %v1150_v21 }
  0x64   :  { %v227_v36 = vpack.c.bf16 %v179_v29, %v177_v28 }
  0x65   :  { %v243_v37 = vpack.c.bf16 %v211_v31, %v209_v30 }
  0x67   :  { %v1414_v17 = vpop.permute.xlu2 %741 }
  0x6f   :  { %v1418_v40 = vpop.permute.xlu2 %756 }
  0x71   :  { %438 = vmatmul.bf16.gmra.mxu0 %v223_v49  ;;  %v1433_v49 = vld [vmem:[%s1586_s3] ss:$0 sm:$0xff] }
  0x72   :  { %478 = vmatmul.bf16.gmra.mxu2 %v239_v50  ;;  %527 = vmatmul.bf16.gmra.mxu1 %v224_v51 }
  0x73   :  { %567 = vmatmul.bf16.gmra.mxu3 %v240_v52 }
  0x76   :  { %v1402_v59 = vpop.permute.xlu1 %726 }
  0x77   :  { %v717_v9 = vpop.permute.xlu0 %716  ;;  %v1424_v43 = vpop.permute.xlu2 %771 }
  0x7e   :  { %v1406_v14 = vpop.permute.xlu1 %731 }
  0x7f   :  { %v722_v18 = vpop.permute.xlu0 %721  ;;  %v1435_v51 = vpop.permute.xlu2 %786 }
  0x81   :  { %443 = vmatmul.bf16.gmra.mxu0 %v225_v10 }
  0x82   :  { %483 = vmatmul.bf16.gmra.mxu2 %v241_v11  ;;  %532 = vmatmul.bf16.gmra.mxu1 %v226_v12 }
  0x83   :  { %572 = vmatmul.bf16.gmra.mxu3 %v242_v13 }
  0x86   :  { %v1416_v27 = vpop.permute.xlu1 %751 }
  0x87   :  { %v1420_v41 = vpop.permute.xlu0 %746  ;;  %v802_v3 = vpop.permute.xlu2 %801 }
  0x8e   :  { %v1422_v42 = vpop.permute.xlu1 %766 }
  0x8f   :  { %v1426_v44 = vpop.permute.xlu0 %761 }
  0x91   :  { %448 = vmatmul.bf16.gmra.mxu0 %v227_v36 }
  0x92   :  { %488 = vmatmul.bf16.gmra.mxu2 %v243_v37  ;;  %537 = vmatmul.bf16.gmra.mxu1 %v228_v38 }
  0x93   :  { %577 = vmatmul.bf16.gmra.mxu3 %v244_v39 }
  0x96   :  { %v1428_v45 = vpop.permute.xlu1 %781 }
  0x97   :  { %v1437_v52 = vpop.permute.xlu0 %776 }
  0x9e   :  { %v414_v46 = vpop.f32.mrf.mxu0  ;;  %v797_v56 = vpop.permute.xlu1 %796 }
  0x9f   :  { %v503_v47 = vpop.f32.mrf.mxu1  ;;  %v1448_v4 = vpop.permute.xlu0 %791 }
  0xa0   :  { %v504_v48 = vadd.f32 %v503_v47, %v414_v46 }
  0xa2   :  { %v874_v50 = vmul.f32 %v717_v9, %v504_v48  ;;  %v817_v48 = vpop.permute.xlu2 %816 }
  0xa4   :  { %v910_v53 = vadd.f32 %v1433_v49, %v874_v50 }
  0xa5   :  { %v454_v54 = vpop.f32.mrf.mxu2 }
  0xa6   :  { %v543_v55 = vpop.f32.mrf.mxu3  ;;  %942 = vst [vmem:[%s1587_s4] sm:$0xff] %v910_v53  ;;  %v416_v58 = vpop.f32.mrf.mxu0 }
  0xa7   :  { %v544_v57 = vadd.f32 %v543_v55, %v454_v54  ;;  %v505_v60 = vpop.f32.mrf.mxu1  ;;  %v807_v21 = vpop.permute.xlu0 %806 }
  0xa8   :  { %v506_v62 = vadd.f32 %v505_v60, %v416_v58  ;;  %v812_v32 = vpop.permute.xlu1 %811 }
  0xa9   :  { %v890_v61 = vmul.f32 %v797_v56, %v544_v57 }
  0xaa   :  { %v875_v0 = vmul.f32 %v722_v18, %v506_v62 }
  0xab   :  { %v926_v63 = vadd.f32 %v1433_v49, %v890_v61 }
  0xac   :  { %v911_v1 = vadd.f32 %v1433_v49, %v875_v0 }
  0xad   :  { %958 = vst [vmem:[%s1587_s4 + $0x80] sm:$0xff] %v926_v63  ;;  %v456_v2 = vpop.f32.mrf.mxu2 }
  0xae   :  { %v545_v5 = vpop.f32.mrf.mxu3  ;;  %943 = vst [vmem:[%s1587_s4 + $0x8] sm:$0xff] %v911_v1  ;;  %v419_v7 = vpop.f32.mrf.mxu0 }
  0xaf   :  { %v546_v6 = vadd.f32 %v545_v5, %v456_v2  ;;  %v508_v9 = vpop.f32.mrf.mxu1  ;;  %v822_v62 = vpop.permute.xlu0 %821 }
  0xb0   :  { %v509_v11 = vadd.f32 %v508_v9, %v419_v7 }
  0xb1   :  { %v891_v10 = vmul.f32 %v802_v3, %v546_v6 }
  0xb2   :  { %v876_v13 = vmul.f32 %v1402_v59, %v509_v11 }
  0xb3   :  { %v927_v12 = vadd.f32 %v1433_v49, %v891_v10  ;;  %v827_v10 = vpop.permute.xlu1 %826 }
  0xb4   :  { %v912_v15 = vadd.f32 %v1433_v49, %v876_v13 }
  0xb5   :  { %959 = vst [vmem:[%s1587_s4 + $0x88] sm:$0xff] %v927_v12  ;;  %v459_v16 = vpop.f32.mrf.mxu2 }
  0xb6   :  { %v548_v18 = vpop.f32.mrf.mxu3  ;;  %944 = vst [vmem:[%s1587_s4 + $0x10] sm:$0xff] %v912_v15  ;;  %v421_v20 = vpop.f32.mrf.mxu0 }
  0xb7   :  { %v549_v19 = vadd.f32 %v548_v18, %v459_v16  ;;  %v510_v22 = vpop.f32.mrf.mxu1 }
  0xb8   :  { %v511_v24 = vadd.f32 %v510_v22, %v421_v20  ;;  %v832_v22 = vpop.permute.xlu2 %831 }
  0xb9   :  { %v892_v23 = vmul.f32 %v807_v21, %v549_v19 }
  0xba   :  { %v877_v25 = vmul.f32 %v1406_v14, %v511_v24 }
  0xbb   :  { %v928_v59 = vadd.f32 %v1433_v49, %v892_v23 }
  0xbc   :  { %v913_v26 = vadd.f32 %v1433_v49, %v877_v25 }
  0xbd   :  { %960 = vst [vmem:[%s1587_s4 + $0x90] sm:$0xff] %v928_v59  ;;  %v461_v28 = vpop.f32.mrf.mxu2 }
  0xbe   :  { %v550_v29 = vpop.f32.mrf.mxu3  ;;  %945 = vst [vmem:[%s1587_s4 + $0x18] sm:$0xff] %v913_v26  ;;  %v424_v31 = vpop.f32.mrf.mxu0 }
  0xbf   :  { %v551_v30 = vadd.f32 %v550_v29, %v461_v28  ;;  %v513_v33 = vpop.f32.mrf.mxu1 }
  0xc0   :  { %v514_v35 = vadd.f32 %v513_v33, %v424_v31 }
  0xc1   :  { %v893_v34 = vmul.f32 %v812_v32, %v551_v30  ;;  %v837_v32 = vpop.permute.xlu0 %836 }
  0xc2   :  { %v878_v36 = vmul.f32 %v1404_v8, %v514_v35 }
  0xc3   :  { %v929_v14 = vadd.f32 %v1433_v49, %v893_v34 }
  0xc4   :  { %v914_v37 = vadd.f32 %v1433_v49, %v878_v36 }
  0xc5   :  { %961 = vst [vmem:[%s1587_s4 + $0x98] sm:$0xff] %v929_v14  ;;  %v464_v38 = vpop.f32.mrf.mxu2 }
  0xc6   :  { %v553_v39 = vpop.f32.mrf.mxu3  ;;  %946 = vst [vmem:[%s1587_s4 + $0x20] sm:$0xff] %v914_v37  ;;  %v426_v47 = vpop.f32.mrf.mxu0 }
  0xc7   :  { %v554_v46 = vadd.f32 %v553_v39, %v464_v38  ;;  %v515_v50 = vpop.f32.mrf.mxu1 }
  0xc8   :  { %v516_v54 = vadd.f32 %v515_v50, %v426_v47  ;;  %v842_v47 = vpop.permute.xlu1 %841 }
  0xc9   :  { %v894_v53 = vmul.f32 %v817_v48, %v554_v46 }
  0xca   :  { %v879_v55 = vmul.f32 %v1414_v17, %v516_v54 }
  0xcb   :  { %v930_v8 = vadd.f32 %v1433_v49, %v894_v53 }
  0xcc   :  { %v915_v56 = vadd.f32 %v1433_v49, %v879_v55 }
  0xcd   :  { %962 = vst [vmem:[%s1587_s4 + $0xa0] sm:$0xff] %v930_v8  ;;  %v466_v57 = vpop.f32.mrf.mxu2 }
  0xce   :  { %v555_v58 = vpop.f32.mrf.mxu3  ;;  %947 = vst [vmem:[%s1587_s4 + $0x28] sm:$0xff] %v915_v56  ;;  %v429_v61 = vpop.f32.mrf.mxu0 }
  0xcf   :  { %v556_v60 = vadd.f32 %v555_v58, %v466_v57  ;;  %v518_v63 = vpop.f32.mrf.mxu1 }
  0xd0   :  { %v519_v1 = vadd.f32 %v518_v63, %v429_v61 }
  0xd1   :  { %v895_v0 = vmul.f32 %v822_v62, %v556_v60  ;;  %v847_v60 = vpop.permute.xlu2 %846 }
  0xd2   :  { %v880_v2 = vmul.f32 %v1420_v41, %v519_v1 }
  0xd3   :  { %v931_v17 = vadd.f32 %v1433_v49, %v895_v0 }
  0xd4   :  { %v916_v3 = vadd.f32 %v1433_v49, %v880_v2 }
  0xd5   :  { %963 = vst [vmem:[%s1587_s4 + $0xa8] sm:$0xff] %v931_v17  ;;  %v469_v5 = vpop.f32.mrf.mxu2 }
  0xd6   :  { %v558_v6 = vpop.f32.mrf.mxu3  ;;  %948 = vst [vmem:[%s1587_s4 + $0x30] sm:$0xff] %v916_v3  ;;  %v431_v9 = vpop.f32.mrf.mxu0 }
  0xd7   :  { %v559_v7 = vadd.f32 %v558_v6, %v469_v5  ;;  %v520_v11 = vpop.f32.mrf.mxu1  ;;  %v852_v6 = vpop.permute.xlu0 %851 }
  0xd8   :  { %v521_v13 = vadd.f32 %v520_v11, %v431_v9 }
  0xd9   :  { %v896_v12 = vmul.f32 %v827_v10, %v559_v7 }
  0xda   :  { %v881_v15 = vmul.f32 %v1416_v27, %v521_v13 }
  0xdb   :  { %v932_v41 = vadd.f32 %v1433_v49, %v896_v12 }
  0xdc   :  { %v917_v16 = vadd.f32 %v1433_v49, %v881_v15 }
  0xdd   :  { %964 = vst [vmem:[%s1587_s4 + $0xb0] sm:$0xff] %v932_v41  ;;  %v471_v18 = vpop.f32.mrf.mxu2 }
  0xde   :  { %v560_v19 = vpop.f32.mrf.mxu3  ;;  %949 = vst [vmem:[%s1587_s4 + $0x38] sm:$0xff] %v917_v16  ;;  %v434_v21 = vpop.f32.mrf.mxu0 }
  0xdf   :  { %v561_v20 = vadd.f32 %v560_v19, %v471_v18  ;;  %v523_v23 = vpop.f32.mrf.mxu1  ;;  %v857_v18 = vpop.permute.xlu1 %856 }
  0xe0   :  { %v524_v59 = vadd.f32 %v523_v23, %v434_v21 }
  0xe1   :  { %v897_v24 = vmul.f32 %v832_v22, %v561_v20 }
  0xe2   :  { %v882_v25 = vmul.f32 %v1418_v40, %v524_v59 }
  0xe3   :  { %v933_v27 = vadd.f32 %v1433_v49, %v897_v24 }
  0xe4   :  { %v918_v26 = vadd.f32 %v1433_v49, %v882_v25 }
  0xe5   :  { %965 = vst [vmem:[%s1587_s4 + $0xb8] sm:$0xff] %v933_v27  ;;  %v474_v28 = vpop.f32.mrf.mxu2 }
  0xe6   :  { %v563_v29 = vpop.f32.mrf.mxu3  ;;  %950 = vst [vmem:[%s1587_s4 + $0x40] sm:$0xff] %v918_v26  ;;  %v436_v31 = vpop.f32.mrf.mxu0 }
  0xe7   :  { %v564_v30 = vadd.f32 %v563_v29, %v474_v28  ;;  %v525_v33 = vpop.f32.mrf.mxu1  ;;  %v862_v26 = vpop.permute.xlu2 %861 }
  0xe8   :  { %v526_v35 = vadd.f32 %v525_v33, %v436_v31 }
  0xe9   :  { %v898_v34 = vmul.f32 %v837_v32, %v564_v30 }
  0xea   :  { %v883_v14 = vmul.f32 %v1426_v44, %v526_v35 }
  0xeb   :  { %v934_v40 = vadd.f32 %v1433_v49, %v898_v34 }
  0xec   :  { %v919_v36 = vadd.f32 %v1433_v49, %v883_v14  ;;  %v867_v14 = vpop.permute.xlu0 %866 }
  0xed   :  { %966 = vst [vmem:[%s1587_s4 + $0xc0] sm:$0xff] %v934_v40  ;;  %v476_v37 = vpop.f32.mrf.mxu2 }
  0xee   :  { %v565_v38 = vpop.f32.mrf.mxu3  ;;  %951 = vst [vmem:[%s1587_s4 + $0x48] sm:$0xff] %v919_v36  ;;  %v439_v46 = vpop.f32.mrf.mxu0 }
  0xef   :  { %v566_v39 = vadd.f32 %v565_v38, %v476_v37  ;;  %v528_v48 = vpop.f32.mrf.mxu1 }
  0xf0   :  { %v529_v53 = vadd.f32 %v528_v48, %v439_v46 }
  0xf1   :  { %v899_v50 = vmul.f32 %v842_v47, %v566_v39 }
  0xf2   :  { %v884_v54 = vmul.f32 %v1422_v42, %v529_v53  ;;  %v872_v53 = vpop.permute.xlu1 %871 }
  0xf3   :  { %v935_v44 = vadd.f32 %v1433_v49, %v899_v50 }
  0xf4   :  { %v920_v8 = vadd.f32 %v1433_v49, %v884_v54 }
  0xf5   :  { %967 = vst [vmem:[%s1587_s4 + $0xc8] sm:$0xff] %v935_v44  ;;  %v479_v55 = vpop.f32.mrf.mxu2 }
  0xf6   :  { %v568_v56 = vpop.f32.mrf.mxu3  ;;  %952 = vst [vmem:[%s1587_s4 + $0x50] sm:$0xff] %v920_v8  ;;  %v441_v58 = vpop.f32.mrf.mxu0 }
  0xf7   :  { %v569_v57 = vadd.f32 %v568_v56, %v479_v55  ;;  %v530_v61 = vpop.f32.mrf.mxu1 }
  0xf8   :  { %v531_v63 = vadd.f32 %v530_v61, %v441_v58 }
  0xf9   :  { %v900_v62 = vmul.f32 %v847_v60, %v569_v57 }
  0xfa   :  { %v885_v0 = vmul.f32 %v1424_v43, %v531_v63 }
  0xfb   :  { %v936_v42 = vadd.f32 %v1433_v49, %v900_v62 }
  0xfc   :  { %v921_v1 = vadd.f32 %v1433_v49, %v885_v0 }
  0xfd   :  { %968 = vst [vmem:[%s1587_s4 + $0xd0] sm:$0xff] %v936_v42  ;;  %v481_v17 = vpop.f32.mrf.mxu2 }
  0xfe   :  { %v570_v2 = vpop.f32.mrf.mxu3  ;;  %953 = vst [vmem:[%s1587_s4 + $0x58] sm:$0xff] %v921_v1  ;;  %v444_v5 = vpop.f32.mrf.mxu0 }
  0xff   :  { %v571_v3 = vadd.f32 %v570_v2, %v481_v17  ;;  %v533_v7 = vpop.f32.mrf.mxu1 }
 0x100   :  { %v534_v10 = vadd.f32 %v533_v7, %v444_v5 }
 0x101   :  { %v901_v9 = vmul.f32 %v852_v6, %v571_v3 }
 0x102   :  { %v886_v11 = vmul.f32 %v1437_v52, %v534_v10 }
 0x103   :  { %v937_v43 = vadd.f32 %v1433_v49, %v901_v9 }
 0x104   :  { %v922_v12 = vadd.f32 %v1433_v49, %v886_v11 }
 0x105   :  { %969 = vst [vmem:[%s1587_s4 + $0xd8] sm:$0xff] %v937_v43  ;;  %v484_v13 = vpop.f32.mrf.mxu2 }
 0x106   :  { %v573_v41 = vpop.f32.mrf.mxu3  ;;  %954 = vst [vmem:[%s1587_s4 + $0x60] sm:$0xff] %v922_v12  ;;  %v446_v16 = vpop.f32.mrf.mxu0 }
 0x107   :  { %v574_v15 = vadd.f32 %v573_v41, %v484_v13  ;;  %v535_v19 = vpop.f32.mrf.mxu1 }
 0x108   :  { %v536_v21 = vadd.f32 %v535_v19, %v446_v16 }
 0x109   :  { %v902_v20 = vmul.f32 %v857_v18, %v574_v15 }
 0x10a   :  { %v887_v22 = vmul.f32 %v1428_v45, %v536_v21 }
 0x10b   :  { %v938_v52 = vadd.f32 %v1433_v49, %v902_v20 }
 0x10c   :  { %v923_v23 = vadd.f32 %v1433_v49, %v887_v22 }
 0x10d   :  { %970 = vst [vmem:[%s1587_s4 + $0xe0] sm:$0xff] %v938_v52  ;;  %v486_v24 = vpop.f32.mrf.mxu2 }
 0x10e   :  { %v575_v59 = vpop.f32.mrf.mxu3  ;;  %955 = vst [vmem:[%s1587_s4 + $0x68] sm:$0xff] %v923_v23  ;;  %v449_v25 = vpop.f32.mrf.mxu0 }
 0x10f   :  { %v576_v27 = vadd.f32 %v575_v59, %v486_v24  ;;  %v538_v28 = vpop.f32.mrf.mxu1 }
 0x110   :  { %v539_v30 = vadd.f32 %v538_v28, %v449_v25 }
 0x111   :  { %v903_v29 = vmul.f32 %v862_v26, %v576_v27 }
 0x112   :  { %v888_v31 = vmul.f32 %v1435_v51, %v539_v30 }
 0x113   :  { %v939_v45 = vadd.f32 %v1433_v49, %v903_v29 }
 0x114   :  { %v924_v32 = vadd.f32 %v1433_v49, %v888_v31 }
 0x115   :  { %971 = vst [vmem:[%s1587_s4 + $0xe8] sm:$0xff] %v939_v45  ;;  %v489_v33 = vpop.f32.mrf.mxu2 }
 0x116   :  { %v578_v34 = vpop.f32.mrf.mxu3  ;;  %956 = vst [vmem:[%s1587_s4 + $0x70] sm:$0xff] %v924_v32  ;;  %v451_v40 = vpop.f32.mrf.mxu0 }
 0x117   :  { %v579_v35 = vadd.f32 %v578_v34, %v489_v33  ;;  %v540_v36 = vpop.f32.mrf.mxu1 }
 0x118   :  { %v541_v38 = vadd.f32 %v540_v36, %v451_v40 }
 0x119   :  { %v904_v37 = vmul.f32 %v867_v14, %v579_v35 }
 0x11a   :  { %v889_v39 = vmul.f32 %v1448_v4, %v541_v38 }
 0x11b   :  { %v940_v51 = vadd.f32 %v1433_v49, %v904_v37 }
 0x11c   :  { %v925_v46 = vadd.f32 %v1433_v49, %v889_v39 }
 0x11d   :  { %972 = vst [vmem:[%s1587_s4 + $0xf0] sm:$0xff] %v940_v51  ;;  %v491_v47 = vpop.f32.mrf.mxu2 }
 0x11e   :  { %v580_v48 = vpop.f32.mrf.mxu3  ;;  %957 = vst [vmem:[%s1587_s4 + $0x78] sm:$0xff] %v925_v46 }
 0x11f   :  { %v581_v50 = vadd.f32 %v580_v48, %v491_v47 }
 0x121   :  { %v905_v44 = vmul.f32 %v872_v53, %v581_v50 }
 0x123   :  { %v941_v54 = vadd.f32 %v1433_v49, %v905_v44 }
 0x125   :  { %973 = vst [vmem:[%s1587_s4 + $0xf8] sm:$0xff] %v941_v54 }

</bundles_post_ra>
